<compile_context>
chip_gen: v5e
topology: v5e:2x2
jax: 0.10.0
libtpu: 0.0.40
codegen_flags: <defaults>
</compile_context>

<pallas_src>
import math
import functools

import jax
import jax.numpy as jnp
from jax import lax
from jax.experimental import pallas as pl
from jax.experimental.pallas import tpu as pltpu

_SQRT_2_OVER_PI = math.sqrt(2.0 / math.pi)


def _gelu_tanh(x):
    x3 = x * x * x
    return 0.5 * x * (1.0 + jnp.tanh(_SQRT_2_OVER_PI * (x + 0.044715 * x3)))


def _layernorm(x, scale, shift, eps=1e-5):
    mu = jnp.mean(x, axis=-1, keepdims=True)
    var = jnp.mean((x - mu) ** 2, axis=-1, keepdims=True)
    return (x - mu) * lax.rsqrt(var + eps) * scale + shift


def _block_kernel(x_ref,
                  ln1_s_ref, ln1_b_ref,
                  wqkv_ref, bqkv_ref, wo_ref, bo_ref,
                  ln2_s_ref, ln2_b_ref,
                  w1_ref, b1_ref, w2_ref, b2_ref,
                  o_ref, *, n_heads):
    f32, bf16 = jnp.float32, jnp.bfloat16
    x = x_ref[0]                                   # (T, D) f32
    T, D = x.shape
    dh = D // n_heads

    # ---- norm1 (f32, rsqrt on EUP) ----
    xn = _layernorm(x, ln1_s_ref[...], ln1_b_ref[...])

    # ---- full-width fused QKV projection: (T,D)x(D,3D), bf16 operands, f32 acc ----
    qkv = jnp.dot(xn.astype(bf16), wqkv_ref[...],
                  preferred_element_type=f32) + bqkv_ref[...]        # (T, 3D) f32

    # head split (only where attention needs head-major data); 1/sqrt(dh) folded into Wq/bq
    def split_heads(base):
        return jnp.stack(
            [qkv[:, base + h * dh: base + (h + 1) * dh] for h in range(n_heads)],
            axis=0).astype(bf16)                                     # (H, T, dh)
    q = split_heads(0)
    k = split_heads(D)
    v = split_heads(2 * D)

    # ---- causal additive bias generated in-kernel (no resident (T,T) input) ----
    row = lax.broadcasted_iota(jnp.int32, (T, T), 0)
    col = lax.broadcasted_iota(jnp.int32, (T, T), 1)
    bias = jnp.where(col > row, jnp.float32(-1e30), jnp.float32(0.0))

    # ---- causal attention, all heads batched on the leading axis ----
    s = jnp.einsum('hqe,hke->hqk', q, k, preferred_element_type=f32) + bias
    m = jnp.max(s, axis=-1, keepdims=True)
    e = jnp.exp(s - m)
    p = e * pl.reciprocal(jnp.sum(e, axis=-1, keepdims=True), approx=True)
    ctx = jnp.einsum('hqk,hke->hqe', p.astype(bf16), v,
                     preferred_element_type=f32)                     # (H, T, dh)

    # ---- merge heads back into lanes and do one full-width out-projection ----
    ctx2 = jnp.concatenate([ctx[h] for h in range(n_heads)], axis=-1).astype(bf16)  # (T, D)
    attn_out = jnp.dot(ctx2, wo_ref[...], preferred_element_type=f32) + bo_ref[...]

    # dropout(rate=0.0) -> identity; residual
    x1 = x + attn_out

    # ---- norm2 + feed-forward ----
    xn2 = _layernorm(x1, ln2_s_ref[...], ln2_b_ref[...])
    h1 = jnp.dot(xn2.astype(bf16), w1_ref[...],
                 preferred_element_type=f32) + b1_ref[...]
    h1 = _gelu_tanh(h1)
    h2 = jnp.dot(h1.astype(bf16), w2_ref[...],
                 preferred_element_type=f32) + b2_ref[...]

    o_ref[0] = x1 + h2


def _pack_params(params, n_heads):
    """Full-width weight packing (bf16 weights, f32 biases); QK scale folded into Wq/bq."""
    (ln1_s, ln1_b, wq, bq, wk, bk, wv, bv, wo, bo,
     ln2_s, ln2_b, w1, b1, w2, b2) = params
    D = wq.shape[0]
    dh = D // n_heads
    scale = 1.0 / math.sqrt(dh)
    f32, bf16 = jnp.float32, jnp.bfloat16

    wqkv = jnp.concatenate([wq * scale, wk, wv], axis=1).astype(bf16)   # (D, 3D)
    bqkv = jnp.concatenate([bq * scale, bk, bv], axis=1).astype(f32)    # (1, 3D)

    return (ln1_s.astype(f32), ln1_b.astype(f32),
            wqkv, bqkv, wo.astype(bf16), bo.astype(f32),
            ln2_s.astype(f32), ln2_b.astype(f32),
            w1.astype(bf16), b1.astype(f32), w2.astype(bf16), b2.astype(f32))


def _vmem_limit_bytes(T, D, Hff, n_heads, packed):
    """Shape-aware scoped-VMEM budget with headroom, capped at 75% of this gen's VMEM."""
    def padded_bytes(a):
        s = list(a.shape)
        s[-1] = max(-(-s[-1] // 128) * 128, 128)
        if len(s) >= 2:
            s[-2] = max(-(-s[-2] // 8) * 8, 8)
        return math.prod(s) * a.dtype.itemsize

    pad = lambda n, m: -(-n // m) * m
    Tp, Dp, Hp = pad(T, 8), pad(D, 128), pad(Hff, 128)
    dhp, Tl = pad(D // n_heads, 128), pad(T, 128)

    weights = sum(padded_bytes(a) for a in packed)        # single-buffered constants
    act = 0
    act += 2 * 2 * Tp * Dp * 4                            # x + out blocks (double-buffered)
    act += Tp * pad(3 * D, 128) * 4                       # qkv
    act += 3 * n_heads * Tp * dhp * 2                     # q, k, v (bf16)
    act += 3 * n_heads * Tp * Tl * 4                      # scores / exp / probs
    act += n_heads * Tp * dhp * 4                         # ctx
    act += 6 * Tp * Dp * 4                                # xn, x1, attn_out, xn2, h2, slack
    act += 2 * Tp * Hp * 4                                # h1 + gelu temp
    est = weights + act

    cap = 64 * 1024 * 1024
    try:
        cap = pltpu.get_tpu_info().vmem_capacity_bytes
    except Exception:
        pass
    return int(min(2 * est + (16 << 20), int(0.75 * cap)))


def _make_call(B, T, D, Hff, n_heads, vmem_limit, single_buffer_consts):
    def const_spec(shape):
        zeros = (0,) * len(shape)
        if single_buffer_consts and hasattr(pl, "Buffered"):
            return pl.BlockSpec(shape, lambda b, _z=zeros: _z,
                                pipeline_mode=pl.Buffered(1))
        return pl.BlockSpec(shape, lambda b, _z=zeros: _z)

    in_specs = [
        pl.BlockSpec((1, T, D), lambda b: (b, 0, 0)),     # x
        const_spec((1, D)), const_spec((1, D)),           # ln1 scale/shift
        const_spec((D, 3 * D)), const_spec((1, 3 * D)),   # fused full-width Wqkv, bqkv
        const_spec((D, D)), const_spec((1, D)),           # Wo, bo
        const_spec((1, D)), const_spec((1, D)),           # ln2 scale/shift
        const_spec((D, Hff)), const_spec((1, Hff)),       # W1, b1
        const_spec((Hff, D)), const_spec((1, D)),         # W2, b2
    ]

    kernel = functools.partial(_block_kernel, n_heads=n_heads)
    return pl.pallas_call(
        kernel,
        out_shape=jax.ShapeDtypeStruct((B, T, D), jnp.float32),
        grid=(B,),
        in_specs=in_specs,
        out_specs=pl.BlockSpec((1, T, D), lambda b: (b, 0, 0)),
        compiler_params=pltpu.CompilerParams(
            dimension_semantics=("parallel",),
            vmem_limit_bytes=vmem_limit),
    )


def transformer_block(x, params, n_heads):
    B, T, D = x.shape
    packed = _pack_params(params, n_heads)
    Hff = packed[8].shape[1]                              # W1 is (D, Hff)
    vmem_limit = _vmem_limit_bytes(T, D, Hff, n_heads, packed)

    try:
        call = _make_call(B, T, D, Hff, n_heads, vmem_limit, single_buffer_consts=True)
        return call(x, *packed)
    except Exception:
        # Fallback for JAX versions without single-buffered pipeline_mode support.
        call = _make_call(B, T, D, Hff, n_heads, vmem_limit, single_buffer_consts=False)
        return call(x, *packed)


def _reference(x, params, n_heads):
    (ln1_s, ln1_b, wq, bq, wk, bk, wv, bv, wo, bo,
     ln2_s, ln2_b, w1, b1, w2, b2) = params
    B, T, D = x.shape
    dh = D // n_heads

    xn = _layernorm(x, ln1_s, ln1_b)
    q = xn @ wq + bq
    k = xn @ wk + bk
    v = xn @ wv + bv
    q = q.reshape(B, T, n_heads, dh).transpose(0, 2, 1, 3)
    k = k.reshape(B, T, n_heads, dh).transpose(0, 2, 1, 3)
    v = v.reshape(B, T, n_heads, dh).transpose(0, 2, 1, 3)
    scores = jnp.einsum('bhqd,bhkd->bhqk', q, k) / math.sqrt(dh)
    mask = jnp.triu(jnp.ones((T, T), bool), k=1)
    scores = jnp.where(mask, -jnp.inf, scores)
    attw = jax.nn.softmax(scores, axis=-1)
    ctx = jnp.einsum('bhqk,bhkd->bhqd', attw, v).transpose(0, 2, 1, 3).reshape(B, T, D)
    x1 = x + (ctx @ wo + bo)

    xn2 = _layernorm(x1, ln2_s, ln2_b)
    h = _gelu_tanh(xn2 @ w1 + b1)
    return x1 + (h @ w2 + b2)


if __name__ == "__main__":
    # cfg: emb_dim=32, context_length=8, n_heads=4, drop_rate=0.0, qkv_bias=True
    B, T, D, n_heads = 2, 8, 32, 4
    Hff = 4 * D

    key = jax.random.PRNGKey(0)
    keys = jax.random.split(key, 12)
    init = lambda k, shape: (0.02 * jax.random.normal(k, shape)).astype(jnp.float32)

    x = jax.random.normal(keys[0], (B, T, D), dtype=jnp.float32)

    params = (
        jnp.ones((1, D), jnp.float32),   # ln1 scale
        jnp.zeros((1, D), jnp.float32),  # ln1 shift
        init(keys[1], (D, D)), init(keys[2], (1, D)),   # Wq, bq
        init(keys[3], (D, D)), init(keys[4], (1, D)),   # Wk, bk
        init(keys[5], (D, D)), init(keys[6], (1, D)),   # Wv, bv
        init(keys[7], (D, D)), init(keys[8], (1, D)),   # Wo, bo
        jnp.ones((1, D), jnp.float32),   # ln2 scale
        jnp.zeros((1, D), jnp.float32),  # ln2 shift
        init(keys[9], (D, Hff)), jnp.zeros((1, Hff), jnp.float32),   # W1, b1
        init(keys[10], (Hff, D)), jnp.zeros((1, D), jnp.float32),    # W2, b2
    )

    out = transformer_block(x, params, n_heads)
    out = jax.block_until_ready(out)

    ref = _reference(x, params, n_heads)
    assert out.shape == (B, T, D)
    # bf16 matmul operands (f32 accumulation) + approx reciprocal -> loosened tolerance
    err = float(jnp.max(jnp.abs(out - ref)))
    assert jnp.allclose(out, ref, atol=2e-2, rtol=2e-2), f"max abs err {err}"
    print("KERNEL_OK")
</pallas_src>

<mosaic_0001>
module attributes {stable_mosaic.version = 11 : i64} {
  func.func @_block_kernel(%arg0: i32, %arg1: memref<1x8x32xf32, #tpu.memory_space<vmem>>, %arg2: memref<1x32xf32, #tpu.memory_space<vmem>>, %arg3: memref<1x32xf32, #tpu.memory_space<vmem>>, %arg4: memref<32x96xbf16, #tpu.memory_space<vmem>>, %arg5: memref<1x96xf32, #tpu.memory_space<vmem>>, %arg6: memref<32x32xbf16, #tpu.memory_space<vmem>>, %arg7: memref<1x32xf32, #tpu.memory_space<vmem>>, %arg8: memref<1x32xf32, #tpu.memory_space<vmem>>, %arg9: memref<1x32xf32, #tpu.memory_space<vmem>>, %arg10: memref<32x128xbf16, #tpu.memory_space<vmem>>, %arg11: memref<1x128xf32, #tpu.memory_space<vmem>>, %arg12: memref<128x32xbf16, #tpu.memory_space<vmem>>, %arg13: memref<1x32xf32, #tpu.memory_space<vmem>>, %arg14: memref<1x8x32xf32, #tpu.memory_space<vmem>>) attributes {dimension_semantics = [#tpu.dimension_semantics<parallel>], iteration_bounds = array<i64: 2>, scalar_prefetch = 0 : i64, scratch_operands = 0 : i64, tpu.core_type = #tpu.core_type<tc>, window_params = [{transform_indices = @transform_0, window_bounds = array<i64: 1, 8, 32>}, {pipeline_mode = #tpu.pipeline_mode<synchronous>, transform_indices = @transform_1, window_bounds = array<i64: 1, 32>}, {pipeline_mode = #tpu.pipeline_mode<synchronous>, transform_indices = @transform_2, window_bounds = array<i64: 1, 32>}, {pipeline_mode = #tpu.pipeline_mode<synchronous>, transform_indices = @transform_3, window_bounds = array<i64: 32, 96>}, {pipeline_mode = #tpu.pipeline_mode<synchronous>, transform_indices = @transform_4, window_bounds = array<i64: 1, 96>}, {pipeline_mode = #tpu.pipeline_mode<synchronous>, transform_indices = @transform_5, window_bounds = array<i64: 32, 32>}, {pipeline_mode = #tpu.pipeline_mode<synchronous>, transform_indices = @transform_6, window_bounds = array<i64: 1, 32>}, {pipeline_mode = #tpu.pipeline_mode<synchronous>, transform_indices = @transform_7, window_bounds = array<i64: 1, 32>}, {pipeline_mode = #tpu.pipeline_mode<synchronous>, transform_indices = @transform_8, window_bounds = array<i64: 1, 32>}, {pipeline_mode = #tpu.pipeline_mode<synchronous>, transform_indices = @transform_9, window_bounds = array<i64: 32, 128>}, {pipeline_mode = #tpu.pipeline_mode<synchronous>, transform_indices = @transform_10, window_bounds = array<i64: 1, 128>}, {pipeline_mode = #tpu.pipeline_mode<synchronous>, transform_indices = @transform_11, window_bounds = array<i64: 128, 32>}, {pipeline_mode = #tpu.pipeline_mode<synchronous>, transform_indices = @transform_12, window_bounds = array<i64: 1, 32>}, {transform_indices = @transform_13, window_bounds = array<i64: 1, 8, 32>}]} {
    %c0 = arith.constant 0 : index
    %c0_0 = arith.constant 0 : index
    %c0_1 = arith.constant 0 : index
    %0 = vector.load %arg1[%c0, %c0_0, %c0_1] : memref<1x8x32xf32, #tpu.memory_space<vmem>>, vector<1x8x32xf32>
    %1 = vector.shape_cast %0 : vector<1x8x32xf32> to vector<8x32xf32>
    %c0_2 = arith.constant 0 : index
    %c0_3 = arith.constant 0 : index
    %2 = vector.load %arg2[%c0_2, %c0_3] : memref<1x32xf32, #tpu.memory_space<vmem>>, vector<1x32xf32>
    %c0_4 = arith.constant 0 : index
    %c0_5 = arith.constant 0 : index
    %3 = vector.load %arg3[%c0_4, %c0_5] : memref<1x32xf32, #tpu.memory_space<vmem>>, vector<1x32xf32>
    %cst = arith.constant dense<0.000000e+00> : vector<8xf32>
    %4 = vector.multi_reduction <add>, %1, %cst [1] : vector<8x32xf32> to vector<8xf32>
    %5 = vector.shape_cast %4 : vector<8xf32> to vector<8x1xf32>
    %cst_6 = arith.constant 3.200000e+01 : f32
    %6 = vector.broadcast %cst_6 : f32 to vector<8x1xf32>
    %7 = arith.divf %5, %6 : vector<8x1xf32>
    %8 = vector.broadcast %7 : vector<8x1xf32> to vector<8x32xf32>
    %9 = arith.subf %1, %8 : vector<8x32xf32>
    %10 = arith.mulf %9, %9 : vector<8x32xf32>
    %cst_7 = arith.constant dense<0.000000e+00> : vector<8xf32>
    %11 = vector.multi_reduction <add>, %10, %cst_7 [1] : vector<8x32xf32> to vector<8xf32>
    %12 = vector.shape_cast %11 : vector<8xf32> to vector<8x1xf32>
    %cst_8 = arith.constant 3.200000e+01 : f32
    %13 = vector.broadcast %cst_8 : f32 to vector<8x1xf32>
    %14 = arith.divf %12, %13 : vector<8x1xf32>
    %15 = vector.broadcast %7 : vector<8x1xf32> to vector<8x32xf32>
    %16 = arith.subf %1, %15 : vector<8x32xf32>
    %cst_9 = arith.constant 9.99999974E-6 : f32
    %17 = vector.broadcast %cst_9 : f32 to vector<8x1xf32>
    %18 = arith.addf %14, %17 : vector<8x1xf32>
    %19 = math.rsqrt %18 : vector<8x1xf32>
    %20 = vector.broadcast %19 : vector<8x1xf32> to vector<8x32xf32>
    %21 = arith.mulf %16, %20 : vector<8x32xf32>
    %22 = vector.broadcast %2 : vector<1x32xf32> to vector<8x32xf32>
    %23 = arith.mulf %21, %22 : vector<8x32xf32>
    %24 = vector.broadcast %3 : vector<1x32xf32> to vector<8x32xf32>
    %25 = arith.addf %23, %24 : vector<8x32xf32>
    %26 = arith.truncf %25 : vector<8x32xf32> to vector<8x32xbf16>
    %c0_10 = arith.constant 0 : index
    %c0_11 = arith.constant 0 : index
    %27 = vector.load %arg4[%c0_10, %c0_11] : memref<32x96xbf16, #tpu.memory_space<vmem>>, vector<32x96xbf16>
    %cst_12 = arith.constant dense<0.000000e+00> : vector<8x96xf32>
    %28 = tpu.matmul %26, %27, %cst_12 {dimension_numbers = #tpu.dot_dimension_numbers<[1], [0], [0], [1], [0, 0, 1, 1], [], []>} : vector<8x32xbf16>, vector<32x96xbf16>, vector<8x96xf32> -> vector<8x96xf32>
    %c0_13 = arith.constant 0 : index
    %c0_14 = arith.constant 0 : index
    %29 = vector.load %arg5[%c0_13, %c0_14] : memref<1x96xf32, #tpu.memory_space<vmem>>, vector<1x96xf32>
    %30 = vector.broadcast %29 : vector<1x96xf32> to vector<8x96xf32>
    %31 = arith.addf %28, %30 : vector<8x96xf32>
    %32 = vector.extract_strided_slice %31 {offsets = [0, 0], sizes = [8, 8], strides = [1, 1]} : vector<8x96xf32> to vector<8x8xf32>
    %33 = vector.extract_strided_slice %31 {offsets = [0, 8], sizes = [8, 8], strides = [1, 1]} : vector<8x96xf32> to vector<8x8xf32>
    %34 = vector.extract_strided_slice %31 {offsets = [0, 16], sizes = [8, 8], strides = [1, 1]} : vector<8x96xf32> to vector<8x8xf32>
    %35 = vector.extract_strided_slice %31 {offsets = [0, 24], sizes = [8, 8], strides = [1, 1]} : vector<8x96xf32> to vector<8x8xf32>
    %36 = vector.shape_cast %32 : vector<8x8xf32> to vector<1x8x8xf32>
    %37 = vector.shape_cast %33 : vector<8x8xf32> to vector<1x8x8xf32>
    %38 = vector.shape_cast %34 : vector<8x8xf32> to vector<1x8x8xf32>
    %39 = vector.shape_cast %35 : vector<8x8xf32> to vector<1x8x8xf32>
    %40 = tpu.concatenate %36, %37, %38, %39 in 0 : vector<1x8x8xf32>, vector<1x8x8xf32>, vector<1x8x8xf32>, vector<1x8x8xf32> -> vector<4x8x8xf32>
    %41 = arith.truncf %40 : vector<4x8x8xf32> to vector<4x8x8xbf16>
    %42 = vector.extract_strided_slice %31 {offsets = [0, 32], sizes = [8, 8], strides = [1, 1]} : vector<8x96xf32> to vector<8x8xf32>
    %43 = vector.extract_strided_slice %31 {offsets = [0, 40], sizes = [8, 8], strides = [1, 1]} : vector<8x96xf32> to vector<8x8xf32>
    %44 = vector.extract_strided_slice %31 {offsets = [0, 48], sizes = [8, 8], strides = [1, 1]} : vector<8x96xf32> to vector<8x8xf32>
    %45 = vector.extract_strided_slice %31 {offsets = [0, 56], sizes = [8, 8], strides = [1, 1]} : vector<8x96xf32> to vector<8x8xf32>
    %46 = vector.shape_cast %42 : vector<8x8xf32> to vector<1x8x8xf32>
    %47 = vector.shape_cast %43 : vector<8x8xf32> to vector<1x8x8xf32>
    %48 = vector.shape_cast %44 : vector<8x8xf32> to vector<1x8x8xf32>
    %49 = vector.shape_cast %45 : vector<8x8xf32> to vector<1x8x8xf32>
    %50 = tpu.concatenate %46, %47, %48, %49 in 0 : vector<1x8x8xf32>, vector<1x8x8xf32>, vector<1x8x8xf32>, vector<1x8x8xf32> -> vector<4x8x8xf32>
    %51 = arith.truncf %50 : vector<4x8x8xf32> to vector<4x8x8xbf16>
    %52 = vector.extract_strided_slice %31 {offsets = [0, 64], sizes = [8, 8], strides = [1, 1]} : vector<8x96xf32> to vector<8x8xf32>
    %53 = vector.extract_strided_slice %31 {offsets = [0, 72], sizes = [8, 8], strides = [1, 1]} : vector<8x96xf32> to vector<8x8xf32>
    %54 = vector.extract_strided_slice %31 {offsets = [0, 80], sizes = [8, 8], strides = [1, 1]} : vector<8x96xf32> to vector<8x8xf32>
    %55 = vector.extract_strided_slice %31 {offsets = [0, 88], sizes = [8, 8], strides = [1, 1]} : vector<8x96xf32> to vector<8x8xf32>
    %56 = vector.shape_cast %52 : vector<8x8xf32> to vector<1x8x8xf32>
    %57 = vector.shape_cast %53 : vector<8x8xf32> to vector<1x8x8xf32>
    %58 = vector.shape_cast %54 : vector<8x8xf32> to vector<1x8x8xf32>
    %59 = vector.shape_cast %55 : vector<8x8xf32> to vector<1x8x8xf32>
    %60 = tpu.concatenate %56, %57, %58, %59 in 0 : vector<1x8x8xf32>, vector<1x8x8xf32>, vector<1x8x8xf32>, vector<1x8x8xf32> -> vector<4x8x8xf32>
    %61 = arith.truncf %60 : vector<4x8x8xf32> to vector<4x8x8xbf16>
    %62 = tpu.iota {dimensions = array<i32: 0>} : vector<8x8xi32>
    %63 = tpu.iota {dimensions = array<i32: 1>} : vector<8x8xi32>
    %64 = arith.cmpi sgt, %63, %62 : vector<8x8xi32>
    %cst_15 = arith.constant -1.000000e+30 : f32
    %cst_16 = arith.constant 0.000000e+00 : f32
    %65 = vector.broadcast %cst_15 : f32 to vector<8x8xf32>
    %66 = vector.broadcast %cst_16 : f32 to vector<8x8xf32>
    %67 = arith.select %64, %65, %66 : vector<8x8xi1>, vector<8x8xf32>
    "tpu.trace_start"() <{level = 10 : i32, message = "hqe,hke->hqk"}> : () -> ()
    %cst_17 = arith.constant dense<0.000000e+00> : vector<4x8x8xf32>
    %68 = tpu.matmul %41, %51, %cst_17 {dimension_numbers = #tpu.dot_dimension_numbers<[2], [2], [1], [1], [0, 0, 0, 1, 1, 1], [0], [0]>} : vector<4x8x8xbf16>, vector<4x8x8xbf16>, vector<4x8x8xf32> -> vector<4x8x8xf32>
    "tpu.trace_stop"() : () -> ()
    %69 = vector.shape_cast %67 : vector<8x8xf32> to vector<1x8x8xf32>
    %70 = vector.broadcast %69 : vector<1x8x8xf32> to vector<4x8x8xf32>
    %71 = arith.addf %68, %70 : vector<4x8x8xf32>
    %cst_18 = arith.constant dense<0xFF800000> : vector<4x8xf32>
    %72 = vector.multi_reduction <maximumf>, %71, %cst_18 [2] : vector<4x8x8xf32> to vector<4x8xf32>
    %73 = vector.shape_cast %72 : vector<4x8xf32> to vector<4x8x1xf32>
    %74 = vector.broadcast %73 : vector<4x8x1xf32> to vector<4x8x8xf32>
    %75 = arith.subf %71, %74 : vector<4x8x8xf32>
    %76 = math.exp %75 : vector<4x8x8xf32>
    %cst_19 = arith.constant dense<0.000000e+00> : vector<4x8xf32>
    %77 = vector.multi_reduction <add>, %76, %cst_19 [2] : vector<4x8x8xf32> to vector<4x8xf32>
    %78 = vector.shape_cast %77 : vector<4x8xf32> to vector<4x8x1xf32>
    %79 = tpu.reciprocal %78 {approx = true} : vector<4x8x1xf32> -> vector<4x8x1xf32>
    %80 = vector.broadcast %79 : vector<4x8x1xf32> to vector<4x8x8xf32>
    %81 = arith.mulf %76, %80 : vector<4x8x8xf32>
    %82 = arith.truncf %81 : vector<4x8x8xf32> to vector<4x8x8xbf16>
    "tpu.trace_start"() <{level = 10 : i32, message = "hqk,hke->hqe"}> : () -> ()
    %cst_20 = arith.constant dense<0.000000e+00> : vector<4x8x8xf32>
    %83 = tpu.matmul %82, %61, %cst_20 {dimension_numbers = #tpu.dot_dimension_numbers<[2], [1], [1], [2], [0, 0, 0, 1, 1, 2], [0], [0]>} : vector<4x8x8xbf16>, vector<4x8x8xbf16>, vector<4x8x8xf32> -> vector<4x8x8xf32>
    "tpu.trace_stop"() : () -> ()
    %84 = vector.extract_strided_slice %83 {offsets = [0, 0, 0], sizes = [1, 8, 8], strides = [1, 1, 1]} : vector<4x8x8xf32> to vector<1x8x8xf32>
    %85 = vector.shape_cast %84 : vector<1x8x8xf32> to vector<8x8xf32>
    %86 = vector.extract_strided_slice %83 {offsets = [1, 0, 0], sizes = [1, 8, 8], strides = [1, 1, 1]} : vector<4x8x8xf32> to vector<1x8x8xf32>
    %87 = vector.shape_cast %86 : vector<1x8x8xf32> to vector<8x8xf32>
    %88 = vector.extract_strided_slice %83 {offsets = [2, 0, 0], sizes = [1, 8, 8], strides = [1, 1, 1]} : vector<4x8x8xf32> to vector<1x8x8xf32>
    %89 = vector.shape_cast %88 : vector<1x8x8xf32> to vector<8x8xf32>
    %90 = vector.extract_strided_slice %83 {offsets = [3, 0, 0], sizes = [1, 8, 8], strides = [1, 1, 1]} : vector<4x8x8xf32> to vector<1x8x8xf32>
    %91 = vector.shape_cast %90 : vector<1x8x8xf32> to vector<8x8xf32>
    %92 = tpu.concatenate %85, %87, %89, %91 in 1 : vector<8x8xf32>, vector<8x8xf32>, vector<8x8xf32>, vector<8x8xf32> -> vector<8x32xf32>
    %93 = arith.truncf %92 : vector<8x32xf32> to vector<8x32xbf16>
    %c0_21 = arith.constant 0 : index
    %c0_22 = arith.constant 0 : index
    %94 = vector.load %arg6[%c0_21, %c0_22] : memref<32x32xbf16, #tpu.memory_space<vmem>>, vector<32x32xbf16>
    %cst_23 = arith.constant dense<0.000000e+00> : vector<8x32xf32>
    %95 = tpu.matmul %93, %94, %cst_23 {dimension_numbers = #tpu.dot_dimension_numbers<[1], [0], [0], [1], [0, 0, 1, 1], [], []>} : vector<8x32xbf16>, vector<32x32xbf16>, vector<8x32xf32> -> vector<8x32xf32>
    %c0_24 = arith.constant 0 : index
    %c0_25 = arith.constant 0 : index
    %96 = vector.load %arg7[%c0_24, %c0_25] : memref<1x32xf32, #tpu.memory_space<vmem>>, vector<1x32xf32>
    %97 = vector.broadcast %96 : vector<1x32xf32> to vector<8x32xf32>
    %98 = arith.addf %95, %97 : vector<8x32xf32>
    %99 = arith.addf %1, %98 : vector<8x32xf32>
    %c0_26 = arith.constant 0 : index
    %c0_27 = arith.constant 0 : index
    %100 = vector.load %arg8[%c0_26, %c0_27] : memref<1x32xf32, #tpu.memory_space<vmem>>, vector<1x32xf32>
    %c0_28 = arith.constant 0 : index
    %c0_29 = arith.constant 0 : index
    %101 = vector.load %arg9[%c0_28, %c0_29] : memref<1x32xf32, #tpu.memory_space<vmem>>, vector<1x32xf32>
    %cst_30 = arith.constant dense<0.000000e+00> : vector<8xf32>
    %102 = vector.multi_reduction <add>, %99, %cst_30 [1] : vector<8x32xf32> to vector<8xf32>
    %103 = vector.shape_cast %102 : vector<8xf32> to vector<8x1xf32>
    %cst_31 = arith.constant 3.200000e+01 : f32
    %104 = vector.broadcast %cst_31 : f32 to vector<8x1xf32>
    %105 = arith.divf %103, %104 : vector<8x1xf32>
    %106 = vector.broadcast %105 : vector<8x1xf32> to vector<8x32xf32>
    %107 = arith.subf %99, %106 : vector<8x32xf32>
    %108 = arith.mulf %107, %107 : vector<8x32xf32>
    %cst_32 = arith.constant dense<0.000000e+00> : vector<8xf32>
    %109 = vector.multi_reduction <add>, %108, %cst_32 [1] : vector<8x32xf32> to vector<8xf32>
    %110 = vector.shape_cast %109 : vector<8xf32> to vector<8x1xf32>
    %cst_33 = arith.constant 3.200000e+01 : f32
    %111 = vector.broadcast %cst_33 : f32 to vector<8x1xf32>
    %112 = arith.divf %110, %111 : vector<8x1xf32>
    %113 = vector.broadcast %105 : vector<8x1xf32> to vector<8x32xf32>
    %114 = arith.subf %99, %113 : vector<8x32xf32>
    %cst_34 = arith.constant 9.99999974E-6 : f32
    %115 = vector.broadcast %cst_34 : f32 to vector<8x1xf32>
    %116 = arith.addf %112, %115 : vector<8x1xf32>
    %117 = math.rsqrt %116 : vector<8x1xf32>
    %118 = vector.broadcast %117 : vector<8x1xf32> to vector<8x32xf32>
    %119 = arith.mulf %114, %118 : vector<8x32xf32>
    %120 = vector.broadcast %100 : vector<1x32xf32> to vector<8x32xf32>
    %121 = arith.mulf %119, %120 : vector<8x32xf32>
    %122 = vector.broadcast %101 : vector<1x32xf32> to vector<8x32xf32>
    %123 = arith.addf %121, %122 : vector<8x32xf32>
    %124 = arith.truncf %123 : vector<8x32xf32> to vector<8x32xbf16>
    %c0_35 = arith.constant 0 : index
    %c0_36 = arith.constant 0 : index
    %125 = vector.load %arg10[%c0_35, %c0_36] : memref<32x128xbf16, #tpu.memory_space<vmem>>, vector<32x128xbf16>
    %cst_37 = arith.constant dense<0.000000e+00> : vector<8x128xf32>
    %126 = tpu.matmul %124, %125, %cst_37 {dimension_numbers = #tpu.dot_dimension_numbers<[1], [0], [0], [1], [0, 0, 1, 1], [], []>} : vector<8x32xbf16>, vector<32x128xbf16>, vector<8x128xf32> -> vector<8x128xf32>
    %c0_38 = arith.constant 0 : index
    %c0_39 = arith.constant 0 : index
    %127 = vector.load %arg11[%c0_38, %c0_39] : memref<1x128xf32, #tpu.memory_space<vmem>>, vector<1x128xf32>
    %128 = vector.broadcast %127 : vector<1x128xf32> to vector<8x128xf32>
    %129 = arith.addf %126, %128 : vector<8x128xf32>
    %130 = arith.mulf %129, %129 : vector<8x128xf32>
    %131 = arith.mulf %130, %129 : vector<8x128xf32>
    %cst_40 = arith.constant 5.000000e-01 : f32
    %132 = vector.broadcast %cst_40 : f32 to vector<8x128xf32>
    %133 = arith.mulf %132, %129 : vector<8x128xf32>
    %cst_41 = arith.constant 4.471500e-02 : f32
    %134 = vector.broadcast %cst_41 : f32 to vector<8x128xf32>
    %135 = arith.mulf %134, %131 : vector<8x128xf32>
    %136 = arith.addf %129, %135 : vector<8x128xf32>
    %cst_42 = arith.constant 0.797884583 : f32
    %137 = vector.broadcast %cst_42 : f32 to vector<8x128xf32>
    %138 = arith.mulf %137, %136 : vector<8x128xf32>
    %139 = math.tanh %138 : vector<8x128xf32>
    %cst_43 = arith.constant 1.000000e+00 : f32
    %140 = vector.broadcast %cst_43 : f32 to vector<8x128xf32>
    %141 = arith.addf %140, %139 : vector<8x128xf32>
    %142 = arith.mulf %133, %141 : vector<8x128xf32>
    %143 = arith.truncf %142 : vector<8x128xf32> to vector<8x128xbf16>
    %c0_44 = arith.constant 0 : index
    %c0_45 = arith.constant 0 : index
    %144 = vector.load %arg12[%c0_44, %c0_45] : memref<128x32xbf16, #tpu.memory_space<vmem>>, vector<128x32xbf16>
    %cst_46 = arith.constant dense<0.000000e+00> : vector<8x32xf32>
    %145 = tpu.matmul %143, %144, %cst_46 {dimension_numbers = #tpu.dot_dimension_numbers<[1], [0], [0], [1], [0, 0, 1, 1], [], []>} : vector<8x128xbf16>, vector<128x32xbf16>, vector<8x32xf32> -> vector<8x32xf32>
    %c0_47 = arith.constant 0 : index
    %c0_48 = arith.constant 0 : index
    %146 = vector.load %arg13[%c0_47, %c0_48] : memref<1x32xf32, #tpu.memory_space<vmem>>, vector<1x32xf32>
    %147 = vector.broadcast %146 : vector<1x32xf32> to vector<8x32xf32>
    %148 = arith.addf %145, %147 : vector<8x32xf32>
    %149 = arith.addf %99, %148 : vector<8x32xf32>
    %c0_49 = arith.constant 0 : index
    %c0_50 = arith.constant 0 : index
    %c0_51 = arith.constant 0 : index
    %150 = vector.load %arg14[%c0_49, %c0_50, %c0_51] : memref<1x8x32xf32, #tpu.memory_space<vmem>>, vector<1x8x32xf32>
    %151 = vector.shape_cast %150 : vector<1x8x32xf32> to vector<8x32xf32>
    %152 = vector.shape_cast %149 : vector<8x32xf32> to vector<1x8x32xf32>
    tpu.vector_store %arg14[%c0_49, %c0_50, %c0_51], %152 {strides = array<i32>} : memref<1x8x32xf32, #tpu.memory_space<vmem>>, vector<1x8x32xf32>,
    return
  }
  func.func @transform_0(%arg0: i32) -> (i32, i32, i32) {
    %c0_i32 = arith.constant 0 : i32
    %c0_i32_0 = arith.constant 0 : i32
    %c0_i32_1 = arith.constant 0 : i32
    return %arg0, %c0_i32, %c0_i32_0 : i32, i32, i32
  }
  func.func @transform_1(%arg0: i32) -> (i32, i32) {
    %c0_i32 = arith.constant 0 : i32
    %c0_i32_0 = arith.constant 0 : i32
    %c0_i32_1 = arith.constant 0 : i32
    return %c0_i32, %c0_i32_0 : i32, i32
  }
  func.func @transform_2(%arg0: i32) -> (i32, i32) {
    %c0_i32 = arith.constant 0 : i32
    %c0_i32_0 = arith.constant 0 : i32
    %c0_i32_1 = arith.constant 0 : i32
    return %c0_i32, %c0_i32_0 : i32, i32
  }
  func.func @transform_3(%arg0: i32) -> (i32, i32) {
    %c0_i32 = arith.constant 0 : i32
    %c0_i32_0 = arith.constant 0 : i32
    %c0_i32_1 = arith.constant 0 : i32
    return %c0_i32, %c0_i32_0 : i32, i32
  }
  func.func @transform_4(%arg0: i32) -> (i32, i32) {
    %c0_i32 = arith.constant 0 : i32
    %c0_i32_0 = arith.constant 0 : i32
    %c0_i32_1 = arith.constant 0 : i32
    return %c0_i32, %c0_i32_0 : i32, i32
  }
  func.func @transform_5(%arg0: i32) -> (i32, i32) {
    %c0_i32 = arith.constant 0 : i32
    %c0_i32_0 = arith.constant 0 : i32
    %c0_i32_1 = arith.constant 0 : i32
    return %c0_i32, %c0_i32_0 : i32, i32
  }
  func.func @transform_6(%arg0: i32) -> (i32, i32) {
    %c0_i32 = arith.constant 0 : i32
    %c0_i32_0 = arith.constant 0 : i32
    %c0_i32_1 = arith.constant 0 : i32
    return %c0_i32, %c0_i32_0 : i32, i32
  }
  func.func @transform_7(%arg0: i32) -> (i32, i32) {
    %c0_i32 = arith.constant 0 : i32
    %c0_i32_0 = arith.constant 0 : i32
    %c0_i32_1 = arith.constant 0 : i32
    return %c0_i32, %c0_i32_0 : i32, i32
  }
  func.func @transform_8(%arg0: i32) -> (i32, i32) {
    %c0_i32 = arith.constant 0 : i32
    %c0_i32_0 = arith.constant 0 : i32
    %c0_i32_1 = arith.constant 0 : i32
    return %c0_i32, %c0_i32_0 : i32, i32
  }
  func.func @transform_9(%arg0: i32) -> (i32, i32) {
    %c0_i32 = arith.constant 0 : i32
    %c0_i32_0 = arith.constant 0 : i32
    %c0_i32_1 = arith.constant 0 : i32
    return %c0_i32, %c0_i32_0 : i32, i32
  }
  func.func @transform_10(%arg0: i32) -> (i32, i32) {
    %c0_i32 = arith.constant 0 : i32
    %c0_i32_0 = arith.constant 0 : i32
    %c0_i32_1 = arith.constant 0 : i32
    return %c0_i32, %c0_i32_0 : i32, i32
  }
  func.func @transform_11(%arg0: i32) -> (i32, i32) {
    %c0_i32 = arith.constant 0 : i32
    %c0_i32_0 = arith.constant 0 : i32
    %c0_i32_1 = arith.constant 0 : i32
    return %c0_i32, %c0_i32_0 : i32, i32
  }
  func.func @transform_12(%arg0: i32) -> (i32, i32) {
    %c0_i32 = arith.constant 0 : i32
    %c0_i32_0 = arith.constant 0 : i32
    %c0_i32_1 = arith.constant 0 : i32
    return %c0_i32, %c0_i32_0 : i32, i32
  }
  func.func @transform_13(%arg0: i32) -> (i32, i32, i32) {
    %c0_i32 = arith.constant 0 : i32
    %c0_i32_0 = arith.constant 0 : i32
    %c0_i32_1 = arith.constant 0 : i32
    return %arg0, %c0_i32, %c0_i32_0 : i32, i32, i32
  }
}

module attributes {stable_mosaic.version = 11 : i64} {
  func.func @_block_kernel(%arg0: i32, %arg1: memref<1x8x32xf32, #tpu.memory_space<vmem>>, %arg2: memref<1x32xf32, #tpu.memory_space<vmem>>, %arg3: memref<1x32xf32, #tpu.memory_space<vmem>>, %arg4: memref<32x96xbf16, #tpu.memory_space<vmem>>, %arg5: memref<1x96xf32, #tpu.memory_space<vmem>>, %arg6: memref<32x32xbf16, #tpu.memory_space<vmem>>, %arg7: memref<1x32xf32, #tpu.memory_space<vmem>>, %arg8: memref<1x32xf32, #tpu.memory_space<vmem>>, %arg9: memref<1x32xf32, #tpu.memory_space<vmem>>, %arg10: memref<32x128xbf16, #tpu.memory_space<vmem>>, %arg11: memref<1x128xf32, #tpu.memory_space<vmem>>, %arg12: memref<128x32xbf16, #tpu.memory_space<vmem>>, %arg13: memref<1x32xf32, #tpu.memory_space<vmem>>, %arg14: memref<1x8x32xf32, #tpu.memory_space<vmem>>) attributes {dimension_semantics = [#tpu.dimension_semantics<parallel>], iteration_bounds = array<i64: 2>, scalar_prefetch = 0 : i64, scratch_operands = 0 : i64, tpu.core_type = #tpu.core_type<tc>, window_params = [{transform_indices = @transform_0, window_bounds = array<i64: 1, 8, 32>}, {pipeline_mode = #tpu.pipeline_mode<synchronous>, transform_indices = @transform_1, window_bounds = array<i64: 1, 32>}, {pipeline_mode = #tpu.pipeline_mode<synchronous>, transform_indices = @transform_2, window_bounds = array<i64: 1, 32>}, {pipeline_mode = #tpu.pipeline_mode<synchronous>, transform_indices = @transform_3, window_bounds = array<i64: 32, 96>}, {pipeline_mode = #tpu.pipeline_mode<synchronous>, transform_indices = @transform_4, window_bounds = array<i64: 1, 96>}, {pipeline_mode = #tpu.pipeline_mode<synchronous>, transform_indices = @transform_5, window_bounds = array<i64: 32, 32>}, {pipeline_mode = #tpu.pipeline_mode<synchronous>, transform_indices = @transform_6, window_bounds = array<i64: 1, 32>}, {pipeline_mode = #tpu.pipeline_mode<synchronous>, transform_indices = @transform_7, window_bounds = array<i64: 1, 32>}, {pipeline_mode = #tpu.pipeline_mode<synchronous>, transform_indices = @transform_8, window_bounds = array<i64: 1, 32>}, {pipeline_mode = #tpu.pipeline_mode<synchronous>, transform_indices = @transform_9, window_bounds = array<i64: 32, 128>}, {pipeline_mode = #tpu.pipeline_mode<synchronous>, transform_indices = @transform_10, window_bounds = array<i64: 1, 128>}, {pipeline_mode = #tpu.pipeline_mode<synchronous>, transform_indices = @transform_11, window_bounds = array<i64: 128, 32>}, {pipeline_mode = #tpu.pipeline_mode<synchronous>, transform_indices = @transform_12, window_bounds = array<i64: 1, 32>}, {transform_indices = @transform_13, window_bounds = array<i64: 1, 8, 32>}]} {
    %c0 = arith.constant 0 : index
    %c0_0 = arith.constant 0 : index
    %c0_1 = arith.constant 0 : index
    %0 = vector.load %arg1[%c0, %c0_0, %c0_1] : memref<1x8x32xf32, #tpu.memory_space<vmem>>, vector<1x8x32xf32>
    %1 = vector.shape_cast %0 : vector<1x8x32xf32> to vector<8x32xf32>
    %c0_2 = arith.constant 0 : index
    %c0_3 = arith.constant 0 : index
    %2 = vector.load %arg2[%c0_2, %c0_3] : memref<1x32xf32, #tpu.memory_space<vmem>>, vector<1x32xf32>
    %c0_4 = arith.constant 0 : index
    %c0_5 = arith.constant 0 : index
    %3 = vector.load %arg3[%c0_4, %c0_5] : memref<1x32xf32, #tpu.memory_space<vmem>>, vector<1x32xf32>
    %cst = arith.constant dense<0.000000e+00> : vector<8xf32>
    %4 = vector.multi_reduction <add>, %1, %cst [1] : vector<8x32xf32> to vector<8xf32>
    %5 = vector.shape_cast %4 : vector<8xf32> to vector<8x1xf32>
    %cst_6 = arith.constant 3.200000e+01 : f32
    %6 = vector.broadcast %cst_6 : f32 to vector<8x1xf32>
    %7 = arith.divf %5, %6 : vector<8x1xf32>
    %8 = vector.broadcast %7 : vector<8x1xf32> to vector<8x32xf32>
    %9 = arith.subf %1, %8 : vector<8x32xf32>
    %10 = arith.mulf %9, %9 : vector<8x32xf32>
    %cst_7 = arith.constant dense<0.000000e+00> : vector<8xf32>
    %11 = vector.multi_reduction <add>, %10, %cst_7 [1] : vector<8x32xf32> to vector<8xf32>
    %12 = vector.shape_cast %11 : vector<8xf32> to vector<8x1xf32>
    %cst_8 = arith.constant 3.200000e+01 : f32
    %13 = vector.broadcast %cst_8 : f32 to vector<8x1xf32>
    %14 = arith.divf %12, %13 : vector<8x1xf32>
    %15 = vector.broadcast %7 : vector<8x1xf32> to vector<8x32xf32>
    %16 = arith.subf %1, %15 : vector<8x32xf32>
    %cst_9 = arith.constant 9.99999974E-6 : f32
    %17 = vector.broadcast %cst_9 : f32 to vector<8x1xf32>
    %18 = arith.addf %14, %17 : vector<8x1xf32>
    %19 = math.rsqrt %18 : vector<8x1xf32>
    %20 = vector.broadcast %19 : vector<8x1xf32> to vector<8x32xf32>
    %21 = arith.mulf %16, %20 : vector<8x32xf32>
    %22 = vector.broadcast %2 : vector<1x32xf32> to vector<8x32xf32>
    %23 = arith.mulf %21, %22 : vector<8x32xf32>
    %24 = vector.broadcast %3 : vector<1x32xf32> to vector<8x32xf32>
    %25 = arith.addf %23, %24 : vector<8x32xf32>
    %26 = arith.truncf %25 : vector<8x32xf32> to vector<8x32xbf16>
    %c0_10 = arith.constant 0 : index
    %c0_11 = arith.constant 0 : index
    %27 = vector.load %arg4[%c0_10, %c0_11] : memref<32x96xbf16, #tpu.memory_space<vmem>>, vector<32x96xbf16>
    %cst_12 = arith.constant dense<0.000000e+00> : vector<8x96xf32>
    %28 = tpu.matmul %26, %27, %cst_12 {dimension_numbers = #tpu.dot_dimension_numbers<[1], [0], [0], [1], [0, 0, 1, 1], [], []>} : vector<8x32xbf16>, vector<32x96xbf16>, vector<8x96xf32> -> vector<8x96xf32>
    %c0_13 = arith.constant 0 : index
    %c0_14 = arith.constant 0 : index
    %29 = vector.load %arg5[%c0_13, %c0_14] : memref<1x96xf32, #tpu.memory_space<vmem>>, vector<1x96xf32>
    %30 = vector.broadcast %29 : vector<1x96xf32> to vector<8x96xf32>
    %31 = arith.addf %28, %30 : vector<8x96xf32>
    %32 = vector.extract_strided_slice %31 {offsets = [0, 0], sizes = [8, 8], strides = [1, 1]} : vector<8x96xf32> to vector<8x8xf32>
    %33 = vector.extract_strided_slice %31 {offsets = [0, 8], sizes = [8, 8], strides = [1, 1]} : vector<8x96xf32> to vector<8x8xf32>
    %34 = vector.extract_strided_slice %31 {offsets = [0, 16], sizes = [8, 8], strides = [1, 1]} : vector<8x96xf32> to vector<8x8xf32>
    %35 = vector.extract_strided_slice %31 {offsets = [0, 24], sizes = [8, 8], strides = [1, 1]} : vector<8x96xf32> to vector<8x8xf32>
    %36 = vector.shape_cast %32 : vector<8x8xf32> to vector<1x8x8xf32>
    %37 = vector.shape_cast %33 : vector<8x8xf32> to vector<1x8x8xf32>
    %38 = vector.shape_cast %34 : vector<8x8xf32> to vector<1x8x8xf32>
    %39 = vector.shape_cast %35 : vector<8x8xf32> to vector<1x8x8xf32>
    %40 = tpu.concatenate %36, %37, %38, %39 in 0 : vector<1x8x8xf32>, vector<1x8x8xf32>, vector<1x8x8xf32>, vector<1x8x8xf32> -> vector<4x8x8xf32>
    %41 = arith.truncf %40 : vector<4x8x8xf32> to vector<4x8x8xbf16>
    %42 = vector.extract_strided_slice %31 {offsets = [0, 32], sizes = [8, 8], strides = [1, 1]} : vector<8x96xf32> to vector<8x8xf32>
    %43 = vector.extract_strided_slice %31 {offsets = [0, 40], sizes = [8, 8], strides = [1, 1]} : vector<8x96xf32> to vector<8x8xf32>
    %44 = vector.extract_strided_slice %31 {offsets = [0, 48], sizes = [8, 8], strides = [1, 1]} : vector<8x96xf32> to vector<8x8xf32>
    %45 = vector.extract_strided_slice %31 {offsets = [0, 56], sizes = [8, 8], strides = [1, 1]} : vector<8x96xf32> to vector<8x8xf32>
    %46 = vector.shape_cast %42 : vector<8x8xf32> to vector<1x8x8xf32>
    %47 = vector.shape_cast %43 : vector<8x8xf32> to vector<1x8x8xf32>
    %48 = vector.shape_cast %44 : vector<8x8xf32> to vector<1x8x8xf32>
    %49 = vector.shape_cast %45 : vector<8x8xf32> to vector<1x8x8xf32>
    %50 = tpu.concatenate %46, %47, %48, %49 in 0 : vector<1x8x8xf32>, vector<1x8x8xf32>, vector<1x8x8xf32>, vector<1x8x8xf32> -> vector<4x8x8xf32>
    %51 = arith.truncf %50 : vector<4x8x8xf32> to vector<4x8x8xbf16>
    %52 = vector.extract_strided_slice %31 {offsets = [0, 64], sizes = [8, 8], strides = [1, 1]} : vector<8x96xf32> to vector<8x8xf32>
    %53 = vector.extract_strided_slice %31 {offsets = [0, 72], sizes = [8, 8], strides = [1, 1]} : vector<8x96xf32> to vector<8x8xf32>
    %54 = vector.extract_strided_slice %31 {offsets = [0, 80], sizes = [8, 8], strides = [1, 1]} : vector<8x96xf32> to vector<8x8xf32>
    %55 = vector.extract_strided_slice %31 {offsets = [0, 88], sizes = [8, 8], strides = [1, 1]} : vector<8x96xf32> to vector<8x8xf32>
    %56 = vector.shape_cast %52 : vector<8x8xf32> to vector<1x8x8xf32>
    %57 = vector.shape_cast %53 : vector<8x8xf32> to vector<1x8x8xf32>
    %58 = vector.shape_cast %54 : vector<8x8xf32> to vector<1x8x8xf32>
    %59 = vector.shape_cast %55 : vector<8x8xf32> to vector<1x8x8xf32>
    %60 = tpu.concatenate %56, %57, %58, %59 in 0 : vector<1x8x8xf32>, vector<1x8x8xf32>, vector<1x8x8xf32>, vector<1x8x8xf32> -> vector<4x8x8xf32>
    %61 = arith.truncf %60 : vector<4x8x8xf32> to vector<4x8x8xbf16>
    %62 = tpu.iota {dimensions = array<i32: 0>} : vector<8x8xi32>
    %63 = tpu.iota {dimensions = array<i32: 1>} : vector<8x8xi32>
    %64 = arith.cmpi sgt, %63, %62 : vector<8x8xi32>
    %cst_15 = arith.constant -1.000000e+30 : f32
    %cst_16 = arith.constant 0.000000e+00 : f32
    %65 = vector.broadcast %cst_15 : f32 to vector<8x8xf32>
    %66 = vector.broadcast %cst_16 : f32 to vector<8x8xf32>
    %67 = arith.select %64, %65, %66 : vector<8x8xi1>, vector<8x8xf32>
    "tpu.trace_start"() <{level = 10 : i32, message = "hqe,hke->hqk"}> : () -> ()
    %cst_17 = arith.constant dense<0.000000e+00> : vector<4x8x8xf32>
    %68 = tpu.matmul %41, %51, %cst_17 {dimension_numbers = #tpu.dot_dimension_numbers<[2], [2], [1], [1], [0, 0, 0, 1, 1, 1], [0], [0]>} : vector<4x8x8xbf16>, vector<4x8x8xbf16>, vector<4x8x8xf32> -> vector<4x8x8xf32>
    "tpu.trace_stop"() : () -> ()
    %69 = vector.shape_cast %67 : vector<8x8xf32> to vector<1x8x8xf32>
    %70 = vector.broadcast %69 : vector<1x8x8xf32> to vector<4x8x8xf32>
    %71 = arith.addf %68, %70 : vector<4x8x8xf32>
    %cst_18 = arith.constant dense<0xFF800000> : vector<4x8xf32>
    %72 = vector.multi_reduction <maximumf>, %71, %cst_18 [2] : vector<4x8x8xf32> to vector<4x8xf32>
    %73 = vector.shape_cast %72 : vector<4x8xf32> to vector<4x8x1xf32>
    %74 = vector.broadcast %73 : vector<4x8x1xf32> to vector<4x8x8xf32>
    %75 = arith.subf %71, %74 : vector<4x8x8xf32>
    %76 = math.exp %75 : vector<4x8x8xf32>
    %cst_19 = arith.constant dense<0.000000e+00> : vector<4x8xf32>
    %77 = vector.multi_reduction <add>, %76, %cst_19 [2] : vector<4x8x8xf32> to vector<4x8xf32>
    %78 = vector.shape_cast %77 : vector<4x8xf32> to vector<4x8x1xf32>
    %79 = tpu.reciprocal %78 {approx = true} : vector<4x8x1xf32> -> vector<4x8x1xf32>
    %80 = vector.broadcast %79 : vector<4x8x1xf32> to vector<4x8x8xf32>
    %81 = arith.mulf %76, %80 : vector<4x8x8xf32>
    %82 = arith.truncf %81 : vector<4x8x8xf32> to vector<4x8x8xbf16>
    "tpu.trace_start"() <{level = 10 : i32, message = "hqk,hke->hqe"}> : () -> ()
    %cst_20 = arith.constant dense<0.000000e+00> : vector<4x8x8xf32>
    %83 = tpu.matmul %82, %61, %cst_20 {dimension_numbers = #tpu.dot_dimension_numbers<[2], [1], [1], [2], [0, 0, 0, 1, 1, 2], [0], [0]>} : vector<4x8x8xbf16>, vector<4x8x8xbf16>, vector<4x8x8xf32> -> vector<4x8x8xf32>
    "tpu.trace_stop"() : () -> ()
    %84 = vector.extract_strided_slice %83 {offsets = [0, 0, 0], sizes = [1, 8, 8], strides = [1, 1, 1]} : vector<4x8x8xf32> to vector<1x8x8xf32>
    %85 = vector.shape_cast %84 : vector<1x8x8xf32> to vector<8x8xf32>
    %86 = vector.extract_strided_slice %83 {offsets = [1, 0, 0], sizes = [1, 8, 8], strides = [1, 1, 1]} : vector<4x8x8xf32> to vector<1x8x8xf32>
    %87 = vector.shape_cast %86 : vector<1x8x8xf32> to vector<8x8xf32>
    %88 = vector.extract_strided_slice %83 {offsets = [2, 0, 0], sizes = [1, 8, 8], strides = [1, 1, 1]} : vector<4x8x8xf32> to vector<1x8x8xf32>
    %89 = vector.shape_cast %88 : vector<1x8x8xf32> to vector<8x8xf32>
    %90 = vector.extract_strided_slice %83 {offsets = [3, 0, 0], sizes = [1, 8, 8], strides = [1, 1, 1]} : vector<4x8x8xf32> to vector<1x8x8xf32>
    %91 = vector.shape_cast %90 : vector<1x8x8xf32> to vector<8x8xf32>
    %92 = tpu.concatenate %85, %87, %89, %91 in 1 : vector<8x8xf32>, vector<8x8xf32>, vector<8x8xf32>, vector<8x8xf32> -> vector<8x32xf32>
    %93 = arith.truncf %92 : vector<8x32xf32> to vector<8x32xbf16>
    %c0_21 = arith.constant 0 : index
    %c0_22 = arith.constant 0 : index
    %94 = vector.load %arg6[%c0_21, %c0_22] : memref<32x32xbf16, #tpu.memory_space<vmem>>, vector<32x32xbf16>
    %cst_23 = arith.constant dense<0.000000e+00> : vector<8x32xf32>
    %95 = tpu.matmul %93, %94, %cst_23 {dimension_numbers = #tpu.dot_dimension_numbers<[1], [0], [0], [1], [0, 0, 1, 1], [], []>} : vector<8x32xbf16>, vector<32x32xbf16>, vector<8x32xf32> -> vector<8x32xf32>
    %c0_24 = arith.constant 0 : index
    %c0_25 = arith.constant 0 : index
    %96 = vector.load %arg7[%c0_24, %c0_25] : memref<1x32xf32, #tpu.memory_space<vmem>>, vector<1x32xf32>
    %97 = vector.broadcast %96 : vector<1x32xf32> to vector<8x32xf32>
    %98 = arith.addf %95, %97 : vector<8x32xf32>
    %99 = arith.addf %1, %98 : vector<8x32xf32>
    %c0_26 = arith.constant 0 : index
    %c0_27 = arith.constant 0 : index
    %100 = vector.load %arg8[%c0_26, %c0_27] : memref<1x32xf32, #tpu.memory_space<vmem>>, vector<1x32xf32>
    %c0_28 = arith.constant 0 : index
    %c0_29 = arith.constant 0 : index
    %101 = vector.load %arg9[%c0_28, %c0_29] : memref<1x32xf32, #tpu.memory_space<vmem>>, vector<1x32xf32>
    %cst_30 = arith.constant dense<0.000000e+00> : vector<8xf32>
    %102 = vector.multi_reduction <add>, %99, %cst_30 [1] : vector<8x32xf32> to vector<8xf32>
    %103 = vector.shape_cast %102 : vector<8xf32> to vector<8x1xf32>
    %cst_31 = arith.constant 3.200000e+01 : f32
    %104 = vector.broadcast %cst_31 : f32 to vector<8x1xf32>
    %105 = arith.divf %103, %104 : vector<8x1xf32>
    %106 = vector.broadcast %105 : vector<8x1xf32> to vector<8x32xf32>
    %107 = arith.subf %99, %106 : vector<8x32xf32>
    %108 = arith.mulf %107, %107 : vector<8x32xf32>
    %cst_32 = arith.constant dense<0.000000e+00> : vector<8xf32>
    %109 = vector.multi_reduction <add>, %108, %cst_32 [1] : vector<8x32xf32> to vector<8xf32>
    %110 = vector.shape_cast %109 : vector<8xf32> to vector<8x1xf32>
    %cst_33 = arith.constant 3.200000e+01 : f32
    %111 = vector.broadcast %cst_33 : f32 to vector<8x1xf32>
    %112 = arith.divf %110, %111 : vector<8x1xf32>
    %113 = vector.broadcast %105 : vector<8x1xf32> to vector<8x32xf32>
    %114 = arith.subf %99, %113 : vector<8x32xf32>
    %cst_34 = arith.constant 9.99999974E-6 : f32
    %115 = vector.broadcast %cst_34 : f32 to vector<8x1xf32>
    %116 = arith.addf %112, %115 : vector<8x1xf32>
    %117 = math.rsqrt %116 : vector<8x1xf32>
    %118 = vector.broadcast %117 : vector<8x1xf32> to vector<8x32xf32>
    %119 = arith.mulf %114, %118 : vector<8x32xf32>
    %120 = vector.broadcast %100 : vector<1x32xf32> to vector<8x32xf32>
    %121 = arith.mulf %119, %120 : vector<8x32xf32>
    %122 = vector.broadcast %101 : vector<1x32xf32> to vector<8x32xf32>
    %123 = arith.addf %121, %122 : vector<8x32xf32>
    %124 = arith.truncf %123 : vector<8x32xf32> to vector<8x32xbf16>
    %c0_35 = arith.constant 0 : index
    %c0_36 = arith.constant 0 : index
    %125 = vector.load %arg10[%c0_35, %c0_36] : memref<32x128xbf16, #tpu.memory_space<vmem>>, vector<32x128xbf16>
    %cst_37 = arith.constant dense<0.000000e+00> : vector<8x128xf32>
    %126 = tpu.matmul %124, %125, %cst_37 {dimension_numbers = #tpu.dot_dimension_numbers<[1], [0], [0], [1], [0, 0, 1, 1], [], []>} : vector<8x32xbf16>, vector<32x128xbf16>, vector<8x128xf32> -> vector<8x128xf32>
    %c0_38 = arith.constant 0 : index
    %c0_39 = arith.constant 0 : index
    %127 = vector.load %arg11[%c0_38, %c0_39] : memref<1x128xf32, #tpu.memory_space<vmem>>, vector<1x128xf32>
    %128 = vector.broadcast %127 : vector<1x128xf32> to vector<8x128xf32>
    %129 = arith.addf %126, %128 : vector<8x128xf32>
    %130 = arith.mulf %129, %129 : vector<8x128xf32>
    %131 = arith.mulf %130, %129 : vector<8x128xf32>
    %cst_40 = arith.constant 5.000000e-01 : f32
    %132 = vector.broadcast %cst_40 : f32 to vector<8x128xf32>
    %133 = arith.mulf %132, %129 : vector<8x128xf32>
    %cst_41 = arith.constant 4.471500e-02 : f32
    %134 = vector.broadcast %cst_41 : f32 to vector<8x128xf32>
    %135 = arith.mulf %134, %131 : vector<8x128xf32>
    %136 = arith.addf %129, %135 : vector<8x128xf32>
    %cst_42 = arith.constant 0.797884583 : f32
    %137 = vector.broadcast %cst_42 : f32 to vector<8x128xf32>
    %138 = arith.mulf %137, %136 : vector<8x128xf32>
    %139 = math.tanh %138 : vector<8x128xf32>
    %cst_43 = arith.constant 1.000000e+00 : f32
    %140 = vector.broadcast %cst_43 : f32 to vector<8x128xf32>
    %141 = arith.addf %140, %139 : vector<8x128xf32>
    %142 = arith.mulf %133, %141 : vector<8x128xf32>
    %143 = arith.truncf %142 : vector<8x128xf32> to vector<8x128xbf16>
    %c0_44 = arith.constant 0 : index
    %c0_45 = arith.constant 0 : index
    %144 = vector.load %arg12[%c0_44, %c0_45] : memref<128x32xbf16, #tpu.memory_space<vmem>>, vector<128x32xbf16>
    %cst_46 = arith.constant dense<0.000000e+00> : vector<8x32xf32>
    %145 = tpu.matmul %143, %144, %cst_46 {dimension_numbers = #tpu.dot_dimension_numbers<[1], [0], [0], [1], [0, 0, 1, 1], [], []>} : vector<8x128xbf16>, vector<128x32xbf16>, vector<8x32xf32> -> vector<8x32xf32>
    %c0_47 = arith.constant 0 : index
    %c0_48 = arith.constant 0 : index
    %146 = vector.load %arg13[%c0_47, %c0_48] : memref<1x32xf32, #tpu.memory_space<vmem>>, vector<1x32xf32>
    %147 = vector.broadcast %146 : vector<1x32xf32> to vector<8x32xf32>
    %148 = arith.addf %145, %147 : vector<8x32xf32>
    %149 = arith.addf %99, %148 : vector<8x32xf32>
    %c0_49 = arith.constant 0 : index
    %c0_50 = arith.constant 0 : index
    %c0_51 = arith.constant 0 : index
    %150 = vector.load %arg14[%c0_49, %c0_50, %c0_51] : memref<1x8x32xf32, #tpu.memory_space<vmem>>, vector<1x8x32xf32>
    %151 = vector.shape_cast %150 : vector<1x8x32xf32> to vector<8x32xf32>
    %152 = vector.shape_cast %149 : vector<8x32xf32> to vector<1x8x32xf32>
    tpu.vector_store %arg14[%c0_49, %c0_50, %c0_51], %152 {strides = array<i32>} : memref<1x8x32xf32, #tpu.memory_space<vmem>>, vector<1x8x32xf32>,
    return
  }
  func.func @transform_0(%arg0: i32) -> (i32, i32, i32) {
    %c0_i32 = arith.constant 0 : i32
    %c0_i32_0 = arith.constant 0 : i32
    %c0_i32_1 = arith.constant 0 : i32
    return %arg0, %c0_i32, %c0_i32_0 : i32, i32, i32
  }
  func.func @transform_1(%arg0: i32) -> (i32, i32) {
    %c0_i32 = arith.constant 0 : i32
    %c0_i32_0 = arith.constant 0 : i32
    %c0_i32_1 = arith.constant 0 : i32
    return %c0_i32, %c0_i32_0 : i32, i32
  }
  func.func @transform_2(%arg0: i32) -> (i32, i32) {
    %c0_i32 = arith.constant 0 : i32
    %c0_i32_0 = arith.constant 0 : i32
    %c0_i32_1 = arith.constant 0 : i32
    return %c0_i32, %c0_i32_0 : i32, i32
  }
  func.func @transform_3(%arg0: i32) -> (i32, i32) {
    %c0_i32 = arith.constant 0 : i32
    %c0_i32_0 = arith.constant 0 : i32
    %c0_i32_1 = arith.constant 0 : i32
    return %c0_i32, %c0_i32_0 : i32, i32
  }
  func.func @transform_4(%arg0: i32) -> (i32, i32) {
    %c0_i32 = arith.constant 0 : i32
    %c0_i32_0 = arith.constant 0 : i32
    %c0_i32_1 = arith.constant 0 : i32
    return %c0_i32, %c0_i32_0 : i32, i32
  }
  func.func @transform_5(%arg0: i32) -> (i32, i32) {
    %c0_i32 = arith.constant 0 : i32
    %c0_i32_0 = arith.constant 0 : i32
    %c0_i32_1 = arith.constant 0 : i32
    return %c0_i32, %c0_i32_0 : i32, i32
  }
  func.func @transform_6(%arg0: i32) -> (i32, i32) {
    %c0_i32 = arith.constant 0 : i32
    %c0_i32_0 = arith.constant 0 : i32
    %c0_i32_1 = arith.constant 0 : i32
    return %c0_i32, %c0_i32_0 : i32, i32
  }
  func.func @transform_7(%arg0: i32) -> (i32, i32) {
    %c0_i32 = arith.constant 0 : i32
    %c0_i32_0 = arith.constant 0 : i32
    %c0_i32_1 = arith.constant 0 : i32
    return %c0_i32, %c0_i32_0 : i32, i32
  }
  func.func @transform_8(%arg0: i32) -> (i32, i32) {
    %c0_i32 = arith.constant 0 : i32
    %c0_i32_0 = arith.constant 0 : i32
    %c0_i32_1 = arith.constant 0 : i32
    return %c0_i32, %c0_i32_0 : i32, i32
  }
  func.func @transform_9(%arg0: i32) -> (i32, i32) {
    %c0_i32 = arith.constant 0 : i32
    %c0_i32_0 = arith.constant 0 : i32
    %c0_i32_1 = arith.constant 0 : i32
    return %c0_i32, %c0_i32_0 : i32, i32
  }
  func.func @transform_10(%arg0: i32) -> (i32, i32) {
    %c0_i32 = arith.constant 0 : i32
    %c0_i32_0 = arith.constant 0 : i32
    %c0_i32_1 = arith.constant 0 : i32
    return %c0_i32, %c0_i32_0 : i32, i32
  }
  func.func @transform_11(%arg0: i32) -> (i32, i32) {
    %c0_i32 = arith.constant 0 : i32
    %c0_i32_0 = arith.constant 0 : i32
    %c0_i32_1 = arith.constant 0 : i32
    return %c0_i32, %c0_i32_0 : i32, i32
  }
  func.func @transform_12(%arg0: i32) -> (i32, i32) {
    %c0_i32 = arith.constant 0 : i32
    %c0_i32_0 = arith.constant 0 : i32
    %c0_i32_1 = arith.constant 0 : i32
    return %c0_i32, %c0_i32_0 : i32, i32
  }
  func.func @transform_13(%arg0: i32) -> (i32, i32, i32) {
    %c0_i32 = arith.constant 0 : i32
    %c0_i32_0 = arith.constant 0 : i32
    %c0_i32_1 = arith.constant 0 : i32
    return %arg0, %c0_i32, %c0_i32_0 : i32, i32, i32
  }
}

</mosaic_0001>

<bundles_post_ra>
// kernel: tpu_custom_call.1
= control target key start
LH: loop header
LB: loop body
LE: loop exit
PB: predicated region body
PF: predicated region fallthrough
CT: control target
= control target key end

     0   :  { %s1589_s0 = inlined_call_operand.vmem [shape: f32[2,8,32], index: 0, kind: input, shape index: {}]   ;;  %s1590_s1 = inlined_call_operand.vmem [shape: f32[1,32], index: 1, kind: input, shape index: {}]   ;;  %s1591_s2 = inlined_call_operand.vmem [shape: f32[1,32], index: 2, kind: input, shape index: {}]   ;;  %s1592_s3 = inlined_call_operand.vmem [shape: bf16[32,96], index: 3, kind: input, shape index: {}]   ;;  %s1593_s4 = inlined_call_operand.vmem [shape: f32[1,96], index: 4, kind: input, shape index: {}]   ;;  %s1594_s5 = inlined_call_operand.vmem [shape: bf16[32,32], index: 5, kind: input, shape index: {}]   ;;  %s1595_s6 = inlined_call_operand.vmem [shape: f32[1,32], index: 6, kind: input, shape index: {}]   ;;  %s1596_s7 = inlined_call_operand.vmem [shape: f32[1,32], index: 7, kind: input, shape index: {}]   ;;  %s1597_s8 = inlined_call_operand.vmem [shape: f32[1,32], index: 8, kind: input, shape index: {}]   ;;  %s1598_s9 = inlined_call_operand.vmem [shape: bf16[32,128], index: 9, kind: input, shape index: {}]   ;;  %s1599_s10 = inlined_call_operand.vmem [shape: f32[1,128], index: 10, kind: input, shape index: {}]   ;;  %s1600_s11 = inlined_call_operand.vmem [shape: bf16[128,32], index: 11, kind: input, shape index: {}]   ;;  %s1601_s12 = inlined_call_operand.vmem [shape: f32[1,32], index: 12, kind: input, shape index: {}]   ;;  %s1602_s13 = inlined_call_operand.hbm [shape: f32[2,8,32], index: 13, kind: output, shape index: {}]  }
   0x1   :  { %1603 = sst [smem:[#allocation5_spill]] %s1589_s0 }
   0x2   :  { %1604 = sst [smem:[#allocation6_spill]] %s1590_s1 }
   0x3   :  { %1605 = sst [smem:[#allocation7_spill]] %s1591_s2 }
   0x4   :  { %1606 = sst [smem:[#allocation8_spill]] %s1592_s3 }
   0x5   :  { %18 = vsyncpa [#allocation3], 0 }
   0x6   :  { %20 = vsyncpa [#allocation3 + $0x1], 0  ;;  %s1373_s25 = smov 0   ;;  %s1375_s26 = smov 0  }
   0x7   :  { %s1377_s27 = smov 0   ;;  %s1379_s28 = smov 0  }
   0x8 LB: > { %s1394_s29 = sadd.s32 4294967295, %s1291_s28   ;;  %s1057_s30 = sadd.s32 4294967294, %s1291_s28   ;;  %s1291_s28 = sphi %s1379_s28, %s1616_s28   ;;  %s1287_s27 = sphi %s1377_s27, %s1615_s27   ;;  %s1283_s26 = sphi %s1375_s26, %s1614_s26   ;;  %s1279_s25 = sphi %s1373_s25, %s1613_s25  }
   0x9   : > { %s1398_s14 = sadd.s32 1, %s1291_s28   ;;  %s311_s15 = sadd.s32 1, %s1287_s27 }
   0xa   : > { %s308_s16 = ssub.s32 %s1291_s28, %s1398_s14  ;;  %p321_p0 = scmp.ne.s32.totalorder %s1287_s27, %s1283_s26 }
   0xb   : > { %p309_p1 = scmp.eq.s32.totalorder %s308_s16, 0  ;;  %p322_p2 = scmp.eq.s32.totalorder %s1394_s29, 1 }
   0xc   : > { %p327_p3 = scmp.ne.s32.totalorder %s1283_s26, %s1279_s25  ;;  %p328_p4 = scmp.eq.s32.totalorder %s1057_s30, 1 }
   0xd   : > { %s1409_s17 = scalar_select %p309_p1, %s1287_s27, %s311_s15  }
   0xe   : > { %p1411_p5 = por %p322_p2, %p321_p0  ;;  %p1415_p6 = por %p328_p4, %p327_p3 }
   0xf   : > { %p1060_p7 = scmp.ge.s32.totalorder %s1291_s28, 1  ;;  %p389_p8 = scmp.lt.s32.totalorder %s1291_s28, 3 }
  0x11   : > { %p390_p9 = pnand %p1060_p7, %p389_p8 }
  0x12   : > { %p432_p10 = scmp.lt.s32.totalorder (!%p390_p9), %s1394_s29, 1  ;;  %s1609_s0 = sld [smem:[#allocation5_spill]] (!%p390_p9) }
  0x13   : > { %393 = sbr.rel (%p390_p9) target bundleno = 1997 (0x7cd), region = 72  ;;  %s1610_s3 = sld [smem:[#allocation8_spill]] (!%p390_p9) }
  0x14   : > { %s1611_s1 = sld [smem:[#allocation6_spill]] (!%p390_p9)  ;;  %s1294_s16 = smov (!%p390_p9), 104  }
  0x15   : > { %s1612_s2 = sld [smem:[#allocation7_spill]] (!%p390_p9)  ;;  %s1297_s22 = smov (!%p390_p9), 96  }
  0x16   : > { %s1299_s23 = smov (!%p390_p9), 64   ;;  %s1301_s30 = smov (!%p390_p9), 24  }
  0x17   : > { %s1302_s15 = smov (!%p390_p9), 16  }
  0x18   : > { %s433_s20 = scalar_select %p432_p10, %s1394_s29, 1  ;;  %vm440_vm0 = vcmask 261120   ;;  %v1293_v2 = vmov 32.0   ;;  %v1199_v32 = vld [vmem:[%s1593_s4] ss:$0 sm:$0xff]  ;;  %vm540_vm5 = vcmask 64512   ;;  %v529_v59 = vlaneseq }
  0x19   : > { %1205 = vrcp.f32 %v1293_v2  ;;  %v1135_v14 = vld [vmem:[%s1610_s3 + $0x8] sm:$0xff]  ;;  %v1134_v15 = vld [vmem:[%s1610_s3] sm:$0xff]  ;;  %v1298_v62 = vmov 0.0   ;;  %vm685_vm7 = vcmask 1043456   ;;  %vm778_vm8 = vcmask 130048  }
  0x1a   : > { %s1062_s21 = sshll.u32 %s433_s20, 3  ;;  %508 = vmatpush.bf16.msra.mxu0 %v1135_v14  ;;  %v1197_v25 = vld [vmem:[%s1611_s1] ss:$0 sm:$0xff]  ;;  %s1295_s20 = smov 120   ;;  %v530_v60 = vshrl.u32 %v529_v59, 7  ;;  %v532_v61 = vand.u32 127, %v529_v59 }
  0x1b   : > { %s435_s24 = scalar_lea.vmem %s1609_s0, %s1062_s21  ;;  %v1198_v28 = vld [vmem:[%s1612_s2] ss:$0 sm:$0xff]  ;;  %s1296_s21 = smov 112   ;;  %vm780_vm9 = vcmask 195584  }
  0x1c   : > { %v1426_v0 = vld [vmem:[%s435_s24] sm:$0xff]  ;;  %vm533_vm6 = vcmp.gt.s32.totalorder %v532_v61, %v530_v60  ;;  %s1300_s24 = smov 8   ;;  %s429_s0 = sand.u32 1, %s1283_s26  }
  0x1d   : > { %v441_v1 = vsel %vm440_vm0, %v1426_v0, 0.0  ;;  %v534_v63 = vsel %vm533_vm6, -1e+30, %v1298_v62  ;;  %s1061_s1 = sshll.u32 %s429_s0, 3 }
  0x1e   : > { %442 = vadd.xlane.f32.xlu0 %v441_v1  ;;  %509 = vmatpush.bf16.msra.mxu0 %v1134_v15 }
  0x1f   : > { %v1206_v3 = vpop.eup %1205 }
  0x20   : > { %v445_v4 = vmul.f32 32.0, %v1206_v3  ;;  %vm449_vm1 = vweird.f32 %v1206_v3 }
  0x22   : > { %v446_v5 = vsub.f32 1.0, %v445_v4 }
  0x24   : > { %v447_v6 = vmul.f32 %v1206_v3, %v446_v5 }
  0x26   : > { %v448_v7 = vadd.f32 %v1206_v3, %v447_v6 }
  0x28   : > { %v1430_v8 = vsel %vm449_vm1, %v1206_v3, %v448_v7 }
  0x91   : > { %v443_v9 = vpop.xlane.xlu0 %442 }
  0x92   : > { %v451_v10 = vmul.f32 %v1430_v8, %v443_v9 }
  0x94   : > { %v452_v11 = vsub.f32 %v1426_v0, %v451_v10 }
  0x96   : > { %v453_v12 = vmul.f32 %v452_v11, %v452_v11 }
  0x98   : > { %v454_v13 = vsel %vm440_vm0, %v453_v12, 0.0 }
  0x99   : > { %455 = vadd.xlane.f32.xlu0 %v454_v13 }
 0x10c   : > { %v456_v16 = vpop.xlane.xlu0 %455 }
 0x10d   : > { %v457_v17 = vmul.f32 %v456_v16, %v1430_v8 }
 0x10f   : > { %v458_v18 = vadd.f32 1e-05, %v457_v17 }
 0x111   : > { %1207 = vrsqrt.f32 %v458_v18  ;;  %vm465_vm3 = vweird.f32 %v458_v18 }
 0x117   : > { %v1208_v19 = vpop.eup %1207 }
 0x118   : > { %v460_v20 = vmul.f32 %v1208_v19, %v458_v18  ;;  %vm466_vm2 = vweird.f32 %v1208_v19 }
 0x119   : > { %vm467_vm4 = vmor %vm465_vm3, %vm466_vm2 }
 0x11a   : > { %v461_v21 = vmul.f32 %v1208_v19, %v460_v20 }
 0x11c   : > { %v462_v22 = vmul.f32 0.5, %v461_v21 }
 0x11e   : > { %v463_v23 = vsub.f32 1.5, %v462_v22 }
 0x120   : > { %v464_v24 = vmul.f32 %v1208_v19, %v463_v23 }
 0x122   : > { %v468_v26 = vsel %vm467_vm4, %v1208_v19, %v464_v24 }
 0x123   : > { %v469_v27 = vmul.f32 %v468_v26, %v452_v11 }
 0x125   : > { %v473_v29 = vmul.f32 %v1197_v25, %v469_v27 }
 0x127   : > { %v477_v30 = vadd.f32 %v1198_v28, %v473_v29 }
 0x129   : > { %v478_v31 = vpack.c.bf16 %v477_v30, %v477_v30 }
 0x12b   : > { %1071 = vmatmul.msk.bf16.vlgmr.msra.gmra.mxu0 %vm440_vm0, %v478_v31 }
 0x1a8   : > { %v511_v33 = vpop.f32.mrf.mxu0 }
 0x1a9   : > { %v512_v34 = vadd.f32 %v1199_v32, %v511_v33 }
 0x1ab   : > { %522 = vrot.lane.b32.xlu2 %v512_v34, %s1294_s16  ;;  %516 = vrot.lane.b32.xlu1 %v512_v34, %s1295_s20  ;;  %v525_v44 = vpack.c.bf16 %v512_v34, %v512_v34 }
 0x1ad   : > { %v536_v47 = vunpack.c.l.b16 %v525_v44 }
 0x1af   : > { %v1457_v50 = vpack.c.b16 %v536_v47, %v536_v47 }
 0x1b0   : > { %v513_v35 = vpop.f32.mrf.mxu0 }
 0x1b3   : > { %519 = vrot.lane.b32.xlu1 %v512_v34, %s1296_s21 }
 0x205   : > { %v523_v36 = vpop.permute.xlu2 %522 }
 0x206   : > { %v528_v37 = vpack.c.bf16 %v523_v36, %v523_v36 }
 0x208   : > { %v609_v38 = vunpack.c.l.b16 %v528_v37 }
 0x20a   : > { %v1452_v39 = vpack.c.b16 %v609_v38, %v609_v38 }
 0x20c   : > { %611 = vrot.lane.b32.xlu1 %v1452_v39, %s1297_s22 }
 0x21d   : > { %v517_v40 = vpop.permute.xlu1 %516 }
 0x21e   : > { %v526_v41 = vpack.c.bf16 %v517_v40, %v517_v40 }
 0x220   : > { %v561_v42 = vunpack.c.l.b16 %v526_v41 }
 0x222   : > { %v562_v43 = vpack.c.b16 %v561_v42, %v561_v42 }
 0x224   : > { %563 = vrot.lane.b32.xlu2 %v562_v43, %s1297_s22 }
 0x225   : > { %v520_v45 = vpop.permute.xlu1 %519 }
 0x226   : > { %v527_v46 = vpack.c.bf16 %v520_v45, %v520_v45 }
 0x228   : > { %v585_v48 = vunpack.c.l.b16 %v527_v46 }
 0x22a   : > { %v1455_v49 = vpack.c.b16 %v585_v48, %v585_v48 }
 0x22c   : > { %587 = vrot.lane.b32.xlu0 %v1455_v49, %s1297_s22  ;;  %538 = vrot.lane.b32.xlu2 %v1457_v50, %s1297_s22 }
 0x27e   : > { %v564_v51 = vpop.permute.xlu2 %563  ;;  %v612_v52 = vpop.permute.xlu1 %611 }
 0x27f   : > { %v569_v53 = vsel %vm540_vm5, %v564_v51, 0  ;;  %v617_v54 = vsel %vm540_vm5, %v612_v52, 0 }
 0x280   : > { %578 = vmatpush.bf16.xpose.msra.mxu2 %v569_v53  ;;  %626 = vmatpush.bf16.xpose.msrb.mxu0 %v617_v54 }
 0x286   : > { %v539_v55 = vpop.permute.xlu2 %538 }
 0x287   : > { %1073 = vmatmul.msk.bf16.vlgmr.msra.gmra.mxu2 %vm540_vm5, %v526_v41  ;;  %1075 = vmatmul.msk.bf16.vlgmr.msrb.gmra.mxu0 %vm540_vm5, %v528_v37  ;;  %v545_v56 = vsel %vm540_vm5, %v539_v55, 0 }
 0x288   : > { %554 = vmatpush.bf16.xpose.msra.mxu1 %v545_v56 }
 0x28f   : > { %1072 = vmatmul.msk.bf16.vlgmr.msra.gmra.mxu1 %vm540_vm5, %v525_v44 }
 0x29e   : > { %v588_v57 = vpop.permute.xlu0 %587 }
 0x29f   : > { %v593_v58 = vsel %vm540_vm5, %v588_v57, 0 }
 0x2a0   : > { %602 = vmatpush.bf16.xpose.msra.mxu3 %v593_v58 }
 0x2a7   : > { %1074 = vmatmul.msk.bf16.vlgmr.msra.gmra.mxu3 %vm540_vm5, %v527_v46 }
 0x304   : > { %v628_v1 = vpop.f32.mrf.mxu0 }
 0x305   : > { %v629_v2 = vadd.f32 %v628_v1, %v534_v63 }
 0x307   : > { %v641_v3 = vsel %vm540_vm5, %v629_v2, -inf }
 0x308   : > { %642 = vmax.xlane.f32.xlu0 %v641_v3 }
 0x30a   : > { %v580_v4 = vpop.f32.mrf.mxu2 }
 0x30b   : > { %v581_v5 = vadd.f32 %v580_v4, %v534_v63 }
 0x30c   : > { %v556_v6 = vpop.f32.mrf.mxu1  ;;  %v630_v7 = vpop.f32.mrf.mxu0 }
 0x30d   : > { %v635_v9 = vsel %vm540_vm5, %v581_v5, -inf  ;;  %v557_v15 = vadd.f32 %v556_v6, %v534_v63  ;;  %v1137_v7 = vld [vmem:[%s1594_s5 + $0x8] sm:$0xff] }
 0x30e   : > { %636 = vmax.xlane.f32.xlu1 %v635_v9  ;;  %v1136_v9 = vld [vmem:[%s1594_s5] sm:$0xff] }
 0x30f   : > { %v632_v17 = vsel %vm540_vm5, %v557_v15, -inf }
 0x312   : > { %v582_v10 = vpop.f32.mrf.mxu2 }
 0x314   : > { %v558_v11 = vpop.f32.mrf.mxu1 }
 0x31c   : > { %702 = vrot.lane.b32.xlu0 %v562_v43, %s1299_s23 }
 0x32a   : > { %v604_v12 = vpop.f32.mrf.mxu3 }
 0x32b   : > { %v605_v13 = vadd.f32 %v604_v12, %v534_v63 }
 0x32d   : > { %v638_v14 = vsel %vm540_vm5, %v605_v13, -inf }
 0x32e   : > { %639 = vmax.xlane.f32.xlu2 %v638_v14 }
 0x332   : > { %v606_v16 = vpop.f32.mrf.mxu3 }
 0x336   : > { %633 = vmax.xlane.f32.xlu2 %v632_v17  ;;  %v1200_v17 = vld [vmem:[%s1595_s6] ss:$0 sm:$0xff] }
 0x37b   : > { %v643_v18 = vpop.xlane.xlu0 %642 }
 0x37c   : > { %v647_v19 = vsub.f32 %v629_v2, %v643_v18 }
 0x37e   : > { %v654_v20 = vmul.f32 1.442695, %v647_v19 }
 0x380   : > { %1209 = vpow2.f32 %v654_v20 }
 0x381   : > { %v637_v21 = vpop.xlane.xlu1 %636 }
 0x382   : > { %v645_v22 = vsub.f32 %v581_v5, %v637_v21 }
 0x384   : > { %v650_v23 = vmul.f32 1.442695, %v645_v22 }
 0x386   : > { %v1210_v24 = vpop.eup %1209  ;;  %1211 = vpow2.f32 %v650_v23 }
 0x387   : > { %v665_v25 = vsel %vm540_vm5, %v1210_v24, 0.0 }
 0x388   : > { %666 = vadd.xlane.f32.xlu1 %v665_v25 }
 0x38c   : > { %v1212_v26 = vpop.eup %1211 }
 0x38d   : > { %v659_v29 = vsel %vm540_vm5, %v1212_v26, 0.0 }
 0x38e   : > { %v703_v27 = vpop.permute.xlu0 %702 }
 0x38f   : > { %v708_v28 = vsel %vm685_vm7, %v703_v27, 0 }
 0x390   : > { %717 = vmatpush.bf16.msrb.mxu2 %v708_v28  ;;  %660 = vadd.xlane.f32.xlu1 %v659_v29  ;;  %v1139_v28 = vld [vmem:[%s1598_s9 + $0x8] sm:$0xff]  ;;  %v1147_v29 = vld [vmem:[%s1600_s11 + $0x38] sm:$0xff] }
 0x394   : > { %882 = vmatpush.bf16.msra.mxu2 %v1139_v28 }
 0x3a1   : > { %v640_v30 = vpop.xlane.xlu2 %639 }
 0x3a2   : > { %v646_v31 = vsub.f32 %v605_v13, %v640_v30 }
 0x3a4   : > { %v652_v32 = vmul.f32 1.442695, %v646_v31 }
 0x3a6   : > { %1213 = vpow2.f32 %v652_v32  ;;  %v1146_v32 = vld [vmem:[%s1600_s11 + $0x30] sm:$0xff] }
 0x3a9   : > { %744 = vrot.lane.b32.xlu1 %v1452_v39, %s1299_s23  ;;  %v634_v33 = vpop.xlane.xlu2 %633 }
 0x3aa   : > { %v644_v34 = vsub.f32 %v557_v15, %v634_v33 }
 0x3ac   : > { %v1214_v35 = vpop.eup %1213  ;;  %v648_v36 = vmul.f32 1.442695, %v644_v34 }
 0x3ad   : > { %v662_v37 = vsel %vm540_vm5, %v1214_v35, 0.0 }
 0x3ae   : > { %1215 = vpow2.f32 %v648_v36  ;;  %663 = vadd.xlane.f32.xlu2 %v662_v37 }
 0x3b4   : > { %v1216_v38 = vpop.eup %1215 }
 0x3b5   : > { %v656_v40 = vsel %vm540_vm5, %v1216_v38, 0.0 }
 0x3b6   : > { %657 = vadd.xlane.f32.xlu0 %v656_v40 }
 0x3c6   : > { %723 = vrot.lane.b32.xlu2 %v1455_v49, %s1299_s23 }
 0x3ce   : > { %680 = vrot.lane.b32.xlu2 %v1457_v50, %s1299_s23  ;;  %s431_s23 = scalar_lea.vmem [#allocation2], %s1061_s1  ;;  %s1249_s1 = scalar_lea.hbm %s1602_s13, 16 }
 0x3fb   : > { %v667_v41 = vpop.xlane.xlu1 %666 }
 0x403   : > { %v661_v39 = vpop.xlane.xlu1 %660 }
 0x404   : > { %1217 = vrcp.f32 %v661_v39 }
 0x405   : > { %1219 = vrcp.f32 %v667_v41 }
 0x40a   : > { %v1218_v42 = vpop.eup %1217 }
 0x40b   : > { %v673_v43 = vmul.f32 %v1218_v42, %v1212_v26  ;;  %v1220_v45 = vpop.eup %1219  ;;  %v1202_v42 = vld [vmem:[%s1597_s8] ss:$0 sm:$0xff] }
 0x40c   : > { %v675_v46 = vmul.f32 %v1220_v45, %v1210_v24 }
 0x40d   : > { %v677_v44 = vpack.c.bf16 %v673_v43, %v673_v43 }
 0x40e   : > { %v679_v51 = vpack.c.bf16 %v675_v46, %v675_v46  ;;  %v1145_v46 = vld [vmem:[%s1600_s11 + $0x28] sm:$0xff] }
 0x40f   : > { %1077 = vmatmul.msk.bf16.vlgmr.msrb.gmra.mxu2 %vm540_vm5, %v677_v44 }
 0x41b   : > { %v745_v47 = vpop.permute.xlu1 %744 }
 0x41c   : > { %v750_v48 = vsel %vm685_vm7, %v745_v47, 0  ;;  %v1144_v47 = vld [vmem:[%s1600_s11 + $0x20] sm:$0xff] }
 0x41d   : > { %759 = vmatpush.bf16.msra.mxu0 %v750_v48  ;;  %v1143_v48 = vld [vmem:[%s1600_s11 + $0x18] sm:$0xff] }
 0x420   : > { %1079 = vmatmul.msk.bf16.vlgmr.msra.gmra.mxu0 %vm540_vm5, %v679_v51  ;;  %v1142_v51 = vld [vmem:[%s1600_s11 + $0x10] sm:$0xff] }
 0x421   : > { %v664_v49 = vpop.xlane.xlu2 %663 }
 0x422   : > { %1221 = vrcp.f32 %v664_v49  ;;  %v1141_v49 = vld [vmem:[%s1600_s11 + $0x8] sm:$0xff] }
 0x428   : > { %v1222_v50 = vpop.eup %1221 }
 0x429   : > { %v674_v52 = vmul.f32 %v1222_v50, %v1214_v35  ;;  %v658_v53 = vpop.xlane.xlu0 %657  ;;  %v724_v54 = vpop.permute.xlu2 %723  ;;  %v1140_v50 = vld [vmem:[%s1600_s11] sm:$0xff] }
 0x42a   : > { %1223 = vrcp.f32 %v658_v53  ;;  %v729_v55 = vsel %vm685_vm7, %v724_v54, 0 }
 0x42b   : > { %738 = vmatpush.bf16.msrb.mxu3 %v729_v55  ;;  %v678_v56 = vpack.c.bf16 %v674_v52, %v674_v52  ;;  %v1203_v52 = vld [vmem:[%s1599_s10] ss:$0 sm:$0xff] }
 0x42e   : > { %1078 = vmatmul.msk.bf16.vlgmr.msrb.gmra.mxu3 %vm540_vm5, %v678_v56 }
 0x42f   : > { %967 = vmatpush.bf16.msra.mxu3 %v1147_v29 }
 0x430   : > { %v1224_v57 = vpop.eup %1223 }
 0x431   : > { %v672_v58 = vmul.f32 %v1224_v57, %v1216_v38  ;;  %v681_v59 = vpop.permute.xlu2 %680 }
 0x432   : > { %v687_v60 = vsel %vm685_vm7, %v681_v59, 0 }
 0x433   : > { %v676_v61 = vpack.c.bf16 %v672_v58, %v672_v58  ;;  %696 = vmatpush.bf16.msrb.mxu1 %v687_v60  ;;  %968 = vmatpush.bf16.msra.mxu3 %v1146_v32 }
 0x436   : > { %1076 = vmatmul.msk.bf16.vlgmr.msrb.gmra.mxu1 %vm540_vm5, %v676_v61 }
 0x437   : > { %812 = vmatpush.bf16.msra.mxu1 %v1137_v7  ;;  %969 = vmatpush.bf16.msra.mxu3 %v1145_v46 }
 0x43b   : > { %813 = vmatpush.bf16.msra.mxu1 %v1136_v9  ;;  %970 = vmatpush.bf16.msra.mxu3 %v1144_v47 }
 0x43f   : > { %971 = vmatpush.bf16.msra.mxu3 %v1143_v48 }
 0x443   : > { %972 = vmatpush.bf16.msra.mxu3 %v1142_v51 }
 0x447   : > { %973 = vmatpush.bf16.msra.mxu3 %v1141_v49 }
 0x44b   : > { %974 = vmatpush.bf16.msra.mxu3 %v1140_v50 }
 0x492   : > { %v719_v62 = vpop.f32.mrf.mxu2 }
 0x493   : > { %766 = vrot.lane.b32.xlu1 %v719_v62, %s1300_s24  ;;  %s995_s24 = sshll.u32 %s431_s23, 4  ;;  %s996_s24 = int_to_ptr.vmem [resolvable:$true] %s995_s24 }
 0x49a   : > { %v721_v63 = vpop.f32.mrf.mxu2 }
 0x49d   : > { %v761_v1 = vpop.f32.mrf.mxu0 }
 0x49e   : > { %774 = vrot.lane.b32.xlu1 %v761_v1, %s1301_s30  ;;  %s1131_s30 = sshll.u32 %s1394_s29, 3  ;;  %s983_s29 = scalar_lea.sflag [#allocation3], %s429_s0 }
 0x49f   : > { %s993_s22 = scalar_lea.hbm %s1602_s13, %s1131_s30 }
 0x4a0   : > { %s997_s2 = sshll.u32 %s993_s22, 4  ;;  %s998_s2 = int_to_ptr.hbm [resolvable:$true] %s997_s2 }
 0x4a1   : > { %s1243_s3 = sshra.s32 %s998_s2, 4  ;;  %s1244_s3 = int_to_ptr.hbm [resolvable:$true] %s1243_s3 }
 0x4a2   : > { %p1250_p0 = scmp.lt.s32.totalorder %s1244_s3, %s1602_s13 }
 0x4a5   : > { %v763_v2 = vpop.f32.mrf.mxu0 }
 0x4b1   : > { %v740_v3 = vpop.f32.mrf.mxu3 }
 0x4b2   : > { %770 = vrot.lane.b32.xlu2 %v740_v3, %s1302_s15  ;;  %v1204_v3 = vld [vmem:[%s1601_s12] ss:$0 sm:$0xff]  ;;  %s1245_s15 = scalar_lea.hbm %s1244_s3, 8 }
 0x4b3   : > { %v698_v4 = vpop.f32.mrf.mxu1  ;;  %p1246_p11 = scmp.ne.s32.totalorder %s1244_s3, %s1245_s15  ;;  %p1251_p1 = scmp.lt.s32.totalorder %s1249_s1, %s1245_s15 }
 0x4b5   : > { %p1247_p12 = pnand %p1246_p11, %p1411_p5  ;;  %p1252_p2 = por %p1251_p1, %p1250_p0 }
 0x4b7   : > { %p1248_p13 = pneg %p1247_p12 }
 0x4b9   : > { %v742_v5 = vpop.f32.mrf.mxu3  ;;  %p1253_p3 = pnand %p1252_p2, %p1248_p13 }
 0x4bb   : > { %v700_v6 = vpop.f32.mrf.mxu1 }
 0x505   : > { %v767_v10 = vpop.permute.xlu1 %766 }
 0x506   : > { %v777_v12 = vsel %vm540_vm5, %v698_v4, %v767_v10 }
 0x50c   : > { %v771_v11 = vpop.permute.xlu2 %770 }
 0x50d   : > { %v779_v13 = vsel %vm778_vm8, %v777_v12, %v771_v11 }
 0x510   : > { %v775_v14 = vpop.permute.xlu1 %774 }
 0x511   : > { %v781_v15 = vsel %vm780_vm9, %v779_v13, %v775_v14 }
 0x512   : > { %v782_v16 = vpack.c.bf16 %v781_v15, %v781_v15 }
 0x514   : > { %1088 = vmatmul.msk.bf16.vlgmr.msra.gmra.mxu1 %vm440_vm0, %v782_v16 }
 0x591   : > { %v815_v18 = vpop.f32.mrf.mxu1 }
 0x592   : > { %v816_v19 = vadd.f32 %v1200_v17, %v815_v18 }
 0x594   : > { %v1504_v20 = vadd.f32 %v816_v19, %v1426_v0  ;;  %v1138_v0 = vld [vmem:[%s1598_s9] sm:$0xff] }
 0x595   : > { %883 = vmatpush.bf16.msra.mxu2 %v1138_v0 }
 0x596   : > { %v822_v21 = vsel %vm440_vm0, %v1504_v20, 0.0 }
 0x597   : > { %823 = vadd.xlane.f32.xlu2 %v822_v21 }
 0x599   : > { %v817_v22 = vpop.f32.mrf.mxu1 }
 0x60a   : > { %v824_v23 = vpop.xlane.xlu2 %823 }
 0x60b   : > { %v825_v24 = vmul.f32 %v824_v23, %v1430_v8 }
 0x60d   : > { %v826_v25 = vsub.f32 %v1504_v20, %v825_v24 }
 0x60f   : > { %v827_v26 = vmul.f32 %v826_v25, %v826_v25 }
 0x611   : > { %v828_v27 = vsel %vm440_vm0, %v827_v26, 0.0 }
 0x612   : > { %829 = vadd.xlane.f32.xlu1 %v828_v27 }
 0x685   : > { %v830_v30 = vpop.xlane.xlu1 %829 }
 0x686   : > { %v831_v31 = vmul.f32 %v830_v30, %v1430_v8  ;;  %v1201_v8 = vld [vmem:[%s1596_s7] ss:$0 sm:$0xff] }
 0x688   : > { %v832_v33 = vadd.f32 1e-05, %v831_v31 }
 0x68a   : > { %1225 = vrsqrt.f32 %v832_v33  ;;  %vm839_vm11 = vweird.f32 %v832_v33 }
 0x690   : > { %v1226_v34 = vpop.eup %1225 }
 0x691   : > { %v834_v35 = vmul.f32 %v1226_v34, %v832_v33  ;;  %vm840_vm10 = vweird.f32 %v1226_v34 }
 0x692   : > { %vm841_vm12 = vmor %vm839_vm11, %vm840_vm10 }
 0x693   : > { %v835_v36 = vmul.f32 %v1226_v34, %v834_v35 }
 0x695   : > { %v836_v37 = vmul.f32 0.5, %v835_v36 }
 0x697   : > { %v837_v38 = vsub.f32 1.5, %v836_v37 }
 0x699   : > { %v838_v40 = vmul.f32 %v1226_v34, %v837_v38 }
 0x69b   : > { %v842_v41 = vsel %vm841_vm12, %v1226_v34, %v838_v40 }
 0x69c   : > { %v843_v39 = vmul.f32 %v842_v41, %v826_v25 }
 0x69e   : > { %v847_v43 = vmul.f32 %v1201_v8, %v843_v39 }
 0x6a0   : > { %v851_v44 = vadd.f32 %v1202_v42, %v847_v43 }
 0x6a2   : > { %v852_v45 = vpack.c.bf16 %v851_v44, %v851_v44 }
 0x6a4   : > { %1097 = vmatmul.msk.bf16.vlgmr.msra.gmra.mxu2 %vm440_vm0, %v852_v45 }
 0x727   : > { %v885_v53 = vpop.f32.mrf.mxu2 }
 0x728   : > { %v886_v54 = vadd.f32 %v1203_v52, %v885_v53 }
 0x72a   : > { %v889_v55 = vmul.f32 %v886_v54, %v886_v54  ;;  %v891_v62 = vmul.f32 0.5, %v886_v54 }
 0x72c   : > { %v890_v56 = vmul.f32 %v889_v55, %v886_v54 }
 0x72e   : > { %v892_v57 = vmul.f32 0.044715, %v890_v56 }
 0x72f   : > { %v887_v58 = vpop.f32.mrf.mxu2 }
 0x730   : > { %v893_v59 = vadd.f32 %v892_v57, %v886_v54 }
 0x732   : > { %v894_v60 = vmul.f32 0.7978846, %v893_v59 }
 0x734   : > { %1227 = vtanh.f32 %v894_v60 }
 0x73a   : > { %v1228_v61 = vpop.eup %1227 }
 0x73b   : > { %v896_v63 = vadd.f32 1.0, %v1228_v61 }
 0x73d   : > { %v897_v1 = vmul.f32 %v896_v63, %v891_v62 }
 0x73f   : > { %v898_v2 = vpack.c.bf16 %v897_v1, %v897_v1 }
 0x741   : > { %975 = vmatmul.bf16.vlgmr.msra.gmra.mxu3 %v898_v2 }
 0x7c4   : > { %v976_v4 = vpop.f32.mrf.mxu3 }
 0x7c5   : > { %v977_v5 = vadd.f32 %v1204_v3, %v976_v4 }
 0x7c7   : > { %v980_v6 = vadd.f32 %v977_v5, %v1504_v20 }
 0x7c9   : > { %981 = vst.msk [vmem:[%s431_s23] sm:$0xff] %vm440_vm0, %v980_v6 }
 0x7ca   : > { %1256 = shalt.err (!%p1253_p3)
}
 0x7cb   : > { %1148 = dma.vmem_to_hbm [thread:$0]  (%p1411_p5), %s996_s24, 128, %s998_s2, %s983_s29  }
 0x7cc   : > { %v978_v7 = vpop.f32.mrf.mxu3 }
 0x7cd PF: > { %p1154_p4 = scmp.ge.s32.totalorder %s1291_s28, 2  ;;  %s1009_s0 = sand.u32 1, %s1279_s25  }
 0x7ce   : > { %s1010_s22 = scalar_lea.sflag [#allocation3], %s1009_s0 }
 0x7cf   : > { %p1151_p7 = pnand %p1154_p4, %p1415_p6 }
 0x7d1   : > { %p1152_p8 = pneg %p1151_p7 }
 0x7d3   : > { %1274 = dma.done.wait (%p1152_p8), %s1010_s22, 128  }
 0x7d4   : > { %1276 = vsyncadd (%p1152_p8), %s1010_s22, 4294967168  ;;  %p23_p9 = scmp.ge.s32.totalorder %s1398_s14, 4   ;;  %s1613_s25 = smov %s1283_s26 }
 0x7d5   : > { %s1614_s26 = smov %s1287_s27  ;;  %s1615_s27 = smov %s1409_s17 }
 0x7d6   : > { %s1616_s28 = smov %s1398_s14  ;;  %25 = sbr.rel (!%p23_p9) target bundleno = 8 (0x8), region = 107 }
 0x7db   :  { %1016 = vsyncpa [#allocation3], 1 }
 0x7dc   :  { %1018 = vsyncpa [#allocation3 + $0x1], 1 }

// kernel: tpu_custom_call.1
= control target key start
LH: loop header
LB: loop body
LE: loop exit
PB: predicated region body
PF: predicated region fallthrough
CT: control target
= control target key end

     0   :  { %s1589_s0 = inlined_call_operand.vmem [shape: f32[2,8,32], index: 0, kind: input, shape index: {}]   ;;  %s1590_s1 = inlined_call_operand.vmem [shape: f32[1,32], index: 1, kind: input, shape index: {}]   ;;  %s1591_s2 = inlined_call_operand.vmem [shape: f32[1,32], index: 2, kind: input, shape index: {}]   ;;  %s1592_s3 = inlined_call_operand.vmem [shape: bf16[32,96], index: 3, kind: input, shape index: {}]   ;;  %s1593_s4 = inlined_call_operand.vmem [shape: f32[1,96], index: 4, kind: input, shape index: {}]   ;;  %s1594_s5 = inlined_call_operand.vmem [shape: bf16[32,32], index: 5, kind: input, shape index: {}]   ;;  %s1595_s6 = inlined_call_operand.vmem [shape: f32[1,32], index: 6, kind: input, shape index: {}]   ;;  %s1596_s7 = inlined_call_operand.vmem [shape: f32[1,32], index: 7, kind: input, shape index: {}]   ;;  %s1597_s8 = inlined_call_operand.vmem [shape: f32[1,32], index: 8, kind: input, shape index: {}]   ;;  %s1598_s9 = inlined_call_operand.vmem [shape: bf16[32,128], index: 9, kind: input, shape index: {}]   ;;  %s1599_s10 = inlined_call_operand.vmem [shape: f32[1,128], index: 10, kind: input, shape index: {}]   ;;  %s1600_s11 = inlined_call_operand.vmem [shape: bf16[128,32], index: 11, kind: input, shape index: {}]   ;;  %s1601_s12 = inlined_call_operand.vmem [shape: f32[1,32], index: 12, kind: input, shape index: {}]   ;;  %s1602_s13 = inlined_call_operand.hbm [shape: f32[2,8,32], index: 13, kind: output, shape index: {}]  }
   0x1   :  { %1603 = sst [smem:[#allocation5_spill]] %s1589_s0 }
   0x2   :  { %1604 = sst [smem:[#allocation6_spill]] %s1590_s1 }
   0x3   :  { %1605 = sst [smem:[#allocation7_spill]] %s1591_s2 }
   0x4   :  { %1606 = sst [smem:[#allocation8_spill]] %s1592_s3 }
   0x5   :  { %18 = vsyncpa [#allocation3], 0 }
   0x6   :  { %20 = vsyncpa [#allocation3 + $0x1], 0  ;;  %s1373_s25 = smov 0   ;;  %s1375_s26 = smov 0  }
   0x7   :  { %s1377_s27 = smov 0   ;;  %s1379_s28 = smov 0  }
   0x8 LB: > { %s1394_s29 = sadd.s32 4294967295, %s1291_s28   ;;  %s1057_s30 = sadd.s32 4294967294, %s1291_s28   ;;  %s1291_s28 = sphi %s1379_s28, %s1616_s28   ;;  %s1287_s27 = sphi %s1377_s27, %s1615_s27   ;;  %s1283_s26 = sphi %s1375_s26, %s1614_s26   ;;  %s1279_s25 = sphi %s1373_s25, %s1613_s25  }
   0x9   : > { %s1398_s14 = sadd.s32 1, %s1291_s28   ;;  %s311_s15 = sadd.s32 1, %s1287_s27 }
   0xa   : > { %s308_s16 = ssub.s32 %s1291_s28, %s1398_s14  ;;  %p321_p0 = scmp.ne.s32.totalorder %s1287_s27, %s1283_s26 }
   0xb   : > { %p309_p1 = scmp.eq.s32.totalorder %s308_s16, 0  ;;  %p322_p2 = scmp.eq.s32.totalorder %s1394_s29, 1 }
   0xc   : > { %p327_p3 = scmp.ne.s32.totalorder %s1283_s26, %s1279_s25  ;;  %p328_p4 = scmp.eq.s32.totalorder %s1057_s30, 1 }
   0xd   : > { %s1409_s17 = scalar_select %p309_p1, %s1287_s27, %s311_s15  }
   0xe   : > { %p1411_p5 = por %p322_p2, %p321_p0  ;;  %p1415_p6 = por %p328_p4, %p327_p3 }
   0xf   : > { %p1060_p7 = scmp.ge.s32.totalorder %s1291_s28, 1  ;;  %p389_p8 = scmp.lt.s32.totalorder %s1291_s28, 3 }
  0x11   : > { %p390_p9 = pnand %p1060_p7, %p389_p8 }
  0x12   : > { %p432_p10 = scmp.lt.s32.totalorder (!%p390_p9), %s1394_s29, 1  ;;  %s1609_s0 = sld [smem:[#allocation5_spill]] (!%p390_p9) }
  0x13   : > { %393 = sbr.rel (%p390_p9) target bundleno = 1997 (0x7cd), region = 72  ;;  %s1610_s3 = sld [smem:[#allocation8_spill]] (!%p390_p9) }
  0x14   : > { %s1611_s1 = sld [smem:[#allocation6_spill]] (!%p390_p9)  ;;  %s1294_s16 = smov (!%p390_p9), 104  }
  0x15   : > { %s1612_s2 = sld [smem:[#allocation7_spill]] (!%p390_p9)  ;;  %s1297_s22 = smov (!%p390_p9), 96  }
  0x16   : > { %s1299_s23 = smov (!%p390_p9), 64   ;;  %s1301_s30 = smov (!%p390_p9), 24  }
  0x17   : > { %s1302_s15 = smov (!%p390_p9), 16  }
  0x18   : > { %s433_s20 = scalar_select %p432_p10, %s1394_s29, 1  ;;  %vm440_vm0 = vcmask 261120   ;;  %v1293_v2 = vmov 32.0   ;;  %v1199_v32 = vld [vmem:[%s1593_s4] ss:$0 sm:$0xff]  ;;  %vm540_vm5 = vcmask 64512   ;;  %v529_v59 = vlaneseq }
  0x19   : > { %1205 = vrcp.f32 %v1293_v2  ;;  %v1135_v14 = vld [vmem:[%s1610_s3 + $0x8] sm:$0xff]  ;;  %v1134_v15 = vld [vmem:[%s1610_s3] sm:$0xff]  ;;  %v1298_v62 = vmov 0.0   ;;  %vm685_vm7 = vcmask 1043456   ;;  %vm778_vm8 = vcmask 130048  }
  0x1a   : > { %s1062_s21 = sshll.u32 %s433_s20, 3  ;;  %508 = vmatpush.bf16.msra.mxu0 %v1135_v14  ;;  %v1197_v25 = vld [vmem:[%s1611_s1] ss:$0 sm:$0xff]  ;;  %s1295_s20 = smov 120   ;;  %v530_v60 = vshrl.u32 %v529_v59, 7  ;;  %v532_v61 = vand.u32 127, %v529_v59 }
  0x1b   : > { %s435_s24 = scalar_lea.vmem %s1609_s0, %s1062_s21  ;;  %v1198_v28 = vld [vmem:[%s1612_s2] ss:$0 sm:$0xff]  ;;  %s1296_s21 = smov 112   ;;  %vm780_vm9 = vcmask 195584  }
  0x1c   : > { %v1426_v0 = vld [vmem:[%s435_s24] sm:$0xff]  ;;  %vm533_vm6 = vcmp.gt.s32.totalorder %v532_v61, %v530_v60  ;;  %s1300_s24 = smov 8   ;;  %s429_s0 = sand.u32 1, %s1283_s26  }
  0x1d   : > { %v441_v1 = vsel %vm440_vm0, %v1426_v0, 0.0  ;;  %v534_v63 = vsel %vm533_vm6, -1e+30, %v1298_v62  ;;  %s1061_s1 = sshll.u32 %s429_s0, 3 }
  0x1e   : > { %442 = vadd.xlane.f32.xlu0 %v441_v1  ;;  %509 = vmatpush.bf16.msra.mxu0 %v1134_v15 }
  0x1f   : > { %v1206_v3 = vpop.eup %1205 }
  0x20   : > { %v445_v4 = vmul.f32 32.0, %v1206_v3  ;;  %vm449_vm1 = vweird.f32 %v1206_v3 }
  0x22   : > { %v446_v5 = vsub.f32 1.0, %v445_v4 }
  0x24   : > { %v447_v6 = vmul.f32 %v1206_v3, %v446_v5 }
  0x26   : > { %v448_v7 = vadd.f32 %v1206_v3, %v447_v6 }
  0x28   : > { %v1430_v8 = vsel %vm449_vm1, %v1206_v3, %v448_v7 }
  0x91   : > { %v443_v9 = vpop.xlane.xlu0 %442 }
  0x92   : > { %v451_v10 = vmul.f32 %v1430_v8, %v443_v9 }
  0x94   : > { %v452_v11 = vsub.f32 %v1426_v0, %v451_v10 }
  0x96   : > { %v453_v12 = vmul.f32 %v452_v11, %v452_v11 }
  0x98   : > { %v454_v13 = vsel %vm440_vm0, %v453_v12, 0.0 }
  0x99   : > { %455 = vadd.xlane.f32.xlu0 %v454_v13 }
 0x10c   : > { %v456_v16 = vpop.xlane.xlu0 %455 }
 0x10d   : > { %v457_v17 = vmul.f32 %v456_v16, %v1430_v8 }
 0x10f   : > { %v458_v18 = vadd.f32 1e-05, %v457_v17 }
 0x111   : > { %1207 = vrsqrt.f32 %v458_v18  ;;  %vm465_vm3 = vweird.f32 %v458_v18 }
 0x117   : > { %v1208_v19 = vpop.eup %1207 }
 0x118   : > { %v460_v20 = vmul.f32 %v1208_v19, %v458_v18  ;;  %vm466_vm2 = vweird.f32 %v1208_v19 }
 0x119   : > { %vm467_vm4 = vmor %vm465_vm3, %vm466_vm2 }
 0x11a   : > { %v461_v21 = vmul.f32 %v1208_v19, %v460_v20 }
 0x11c   : > { %v462_v22 = vmul.f32 0.5, %v461_v21 }
 0x11e   : > { %v463_v23 = vsub.f32 1.5, %v462_v22 }
 0x120   : > { %v464_v24 = vmul.f32 %v1208_v19, %v463_v23 }
 0x122   : > { %v468_v26 = vsel %vm467_vm4, %v1208_v19, %v464_v24 }
 0x123   : > { %v469_v27 = vmul.f32 %v468_v26, %v452_v11 }
 0x125   : > { %v473_v29 = vmul.f32 %v1197_v25, %v469_v27 }
 0x127   : > { %v477_v30 = vadd.f32 %v1198_v28, %v473_v29 }
 0x129   : > { %v478_v31 = vpack.c.bf16 %v477_v30, %v477_v30 }
 0x12b   : > { %1071 = vmatmul.msk.bf16.vlgmr.msra.gmra.mxu0 %vm440_vm0, %v478_v31 }
 0x1a8   : > { %v511_v33 = vpop.f32.mrf.mxu0 }
 0x1a9   : > { %v512_v34 = vadd.f32 %v1199_v32, %v511_v33 }
 0x1ab   : > { %522 = vrot.lane.b32.xlu2 %v512_v34, %s1294_s16  ;;  %516 = vrot.lane.b32.xlu1 %v512_v34, %s1295_s20  ;;  %v525_v44 = vpack.c.bf16 %v512_v34, %v512_v34 }
 0x1ad   : > { %v536_v47 = vunpack.c.l.b16 %v525_v44 }
 0x1af   : > { %v1457_v50 = vpack.c.b16 %v536_v47, %v536_v47 }
 0x1b0   : > { %v513_v35 = vpop.f32.mrf.mxu0 }
 0x1b3   : > { %519 = vrot.lane.b32.xlu1 %v512_v34, %s1296_s21 }
 0x205   : > { %v523_v36 = vpop.permute.xlu2 %522 }
 0x206   : > { %v528_v37 = vpack.c.bf16 %v523_v36, %v523_v36 }
 0x208   : > { %v609_v38 = vunpack.c.l.b16 %v528_v37 }
 0x20a   : > { %v1452_v39 = vpack.c.b16 %v609_v38, %v609_v38 }
 0x20c   : > { %611 = vrot.lane.b32.xlu1 %v1452_v39, %s1297_s22 }
 0x21d   : > { %v517_v40 = vpop.permute.xlu1 %516 }
 0x21e   : > { %v526_v41 = vpack.c.bf16 %v517_v40, %v517_v40 }
 0x220   : > { %v561_v42 = vunpack.c.l.b16 %v526_v41 }
 0x222   : > { %v562_v43 = vpack.c.b16 %v561_v42, %v561_v42 }
 0x224   : > { %563 = vrot.lane.b32.xlu2 %v562_v43, %s1297_s22 }
 0x225   : > { %v520_v45 = vpop.permute.xlu1 %519 }
 0x226   : > { %v527_v46 = vpack.c.bf16 %v520_v45, %v520_v45 }
 0x228   : > { %v585_v48 = vunpack.c.l.b16 %v527_v46 }
 0x22a   : > { %v1455_v49 = vpack.c.b16 %v585_v48, %v585_v48 }
 0x22c   : > { %587 = vrot.lane.b32.xlu0 %v1455_v49, %s1297_s22  ;;  %538 = vrot.lane.b32.xlu2 %v1457_v50, %s1297_s22 }
 0x27e   : > { %v564_v51 = vpop.permute.xlu2 %563  ;;  %v612_v52 = vpop.permute.xlu1 %611 }
 0x27f   : > { %v569_v53 = vsel %vm540_vm5, %v564_v51, 0  ;;  %v617_v54 = vsel %vm540_vm5, %v612_v52, 0 }
 0x280   : > { %578 = vmatpush.bf16.xpose.msra.mxu2 %v569_v53  ;;  %626 = vmatpush.bf16.xpose.msrb.mxu0 %v617_v54 }
 0x286   : > { %v539_v55 = vpop.permute.xlu2 %538 }
 0x287   : > { %1073 = vmatmul.msk.bf16.vlgmr.msra.gmra.mxu2 %vm540_vm5, %v526_v41  ;;  %1075 = vmatmul.msk.bf16.vlgmr.msrb.gmra.mxu0 %vm540_vm5, %v528_v37  ;;  %v545_v56 = vsel %vm540_vm5, %v539_v55, 0 }
 0x288   : > { %554 = vmatpush.bf16.xpose.msra.mxu1 %v545_v56 }
 0x28f   : > { %1072 = vmatmul.msk.bf16.vlgmr.msra.gmra.mxu1 %vm540_vm5, %v525_v44 }
 0x29e   : > { %v588_v57 = vpop.permute.xlu0 %587 }
 0x29f   : > { %v593_v58 = vsel %vm540_vm5, %v588_v57, 0 }
 0x2a0   : > { %602 = vmatpush.bf16.xpose.msra.mxu3 %v593_v58 }
 0x2a7   : > { %1074 = vmatmul.msk.bf16.vlgmr.msra.gmra.mxu3 %vm540_vm5, %v527_v46 }
 0x304   : > { %v628_v1 = vpop.f32.mrf.mxu0 }
 0x305   : > { %v629_v2 = vadd.f32 %v628_v1, %v534_v63 }
 0x307   : > { %v641_v3 = vsel %vm540_vm5, %v629_v2, -inf }
 0x308   : > { %642 = vmax.xlane.f32.xlu0 %v641_v3 }
 0x30a   : > { %v580_v4 = vpop.f32.mrf.mxu2 }
 0x30b   : > { %v581_v5 = vadd.f32 %v580_v4, %v534_v63 }
 0x30c   : > { %v556_v6 = vpop.f32.mrf.mxu1  ;;  %v630_v7 = vpop.f32.mrf.mxu0 }
 0x30d   : > { %v635_v9 = vsel %vm540_vm5, %v581_v5, -inf  ;;  %v557_v15 = vadd.f32 %v556_v6, %v534_v63  ;;  %v1137_v7 = vld [vmem:[%s1594_s5 + $0x8] sm:$0xff] }
 0x30e   : > { %636 = vmax.xlane.f32.xlu1 %v635_v9  ;;  %v1136_v9 = vld [vmem:[%s1594_s5] sm:$0xff] }
 0x30f   : > { %v632_v17 = vsel %vm540_vm5, %v557_v15, -inf }
 0x312   : > { %v582_v10 = vpop.f32.mrf.mxu2 }
 0x314   : > { %v558_v11 = vpop.f32.mrf.mxu1 }
 0x31c   : > { %702 = vrot.lane.b32.xlu0 %v562_v43, %s1299_s23 }
 0x32a   : > { %v604_v12 = vpop.f32.mrf.mxu3 }
 0x32b   : > { %v605_v13 = vadd.f32 %v604_v12, %v534_v63 }
 0x32d   : > { %v638_v14 = vsel %vm540_vm5, %v605_v13, -inf }
 0x32e   : > { %639 = vmax.xlane.f32.xlu2 %v638_v14 }
 0x332   : > { %v606_v16 = vpop.f32.mrf.mxu3 }
 0x336   : > { %633 = vmax.xlane.f32.xlu2 %v632_v17  ;;  %v1200_v17 = vld [vmem:[%s1595_s6] ss:$0 sm:$0xff] }
 0x37b   : > { %v643_v18 = vpop.xlane.xlu0 %642 }
 0x37c   : > { %v647_v19 = vsub.f32 %v629_v2, %v643_v18 }
 0x37e   : > { %v654_v20 = vmul.f32 1.442695, %v647_v19 }
 0x380   : > { %1209 = vpow2.f32 %v654_v20 }
 0x381   : > { %v637_v21 = vpop.xlane.xlu1 %636 }
 0x382   : > { %v645_v22 = vsub.f32 %v581_v5, %v637_v21 }
 0x384   : > { %v650_v23 = vmul.f32 1.442695, %v645_v22 }
 0x386   : > { %v1210_v24 = vpop.eup %1209  ;;  %1211 = vpow2.f32 %v650_v23 }
 0x387   : > { %v665_v25 = vsel %vm540_vm5, %v1210_v24, 0.0 }
 0x388   : > { %666 = vadd.xlane.f32.xlu1 %v665_v25 }
 0x38c   : > { %v1212_v26 = vpop.eup %1211 }
 0x38d   : > { %v659_v29 = vsel %vm540_vm5, %v1212_v26, 0.0 }
 0x38e   : > { %v703_v27 = vpop.permute.xlu0 %702 }
 0x38f   : > { %v708_v28 = vsel %vm685_vm7, %v703_v27, 0 }
 0x390   : > { %717 = vmatpush.bf16.msrb.mxu2 %v708_v28  ;;  %660 = vadd.xlane.f32.xlu1 %v659_v29  ;;  %v1139_v28 = vld [vmem:[%s1598_s9 + $0x8] sm:$0xff]  ;;  %v1147_v29 = vld [vmem:[%s1600_s11 + $0x38] sm:$0xff] }
 0x394   : > { %882 = vmatpush.bf16.msra.mxu2 %v1139_v28 }
 0x3a1   : > { %v640_v30 = vpop.xlane.xlu2 %639 }
 0x3a2   : > { %v646_v31 = vsub.f32 %v605_v13, %v640_v30 }
 0x3a4   : > { %v652_v32 = vmul.f32 1.442695, %v646_v31 }
 0x3a6   : > { %1213 = vpow2.f32 %v652_v32  ;;  %v1146_v32 = vld [vmem:[%s1600_s11 + $0x30] sm:$0xff] }
 0x3a9   : > { %744 = vrot.lane.b32.xlu1 %v1452_v39, %s1299_s23  ;;  %v634_v33 = vpop.xlane.xlu2 %633 }
 0x3aa   : > { %v644_v34 = vsub.f32 %v557_v15, %v634_v33 }
 0x3ac   : > { %v1214_v35 = vpop.eup %1213  ;;  %v648_v36 = vmul.f32 1.442695, %v644_v34 }
 0x3ad   : > { %v662_v37 = vsel %vm540_vm5, %v1214_v35, 0.0 }
 0x3ae   : > { %1215 = vpow2.f32 %v648_v36  ;;  %663 = vadd.xlane.f32.xlu2 %v662_v37 }
 0x3b4   : > { %v1216_v38 = vpop.eup %1215 }
 0x3b5   : > { %v656_v40 = vsel %vm540_vm5, %v1216_v38, 0.0 }
 0x3b6   : > { %657 = vadd.xlane.f32.xlu0 %v656_v40 }
 0x3c6   : > { %723 = vrot.lane.b32.xlu2 %v1455_v49, %s1299_s23 }
 0x3ce   : > { %680 = vrot.lane.b32.xlu2 %v1457_v50, %s1299_s23  ;;  %s431_s23 = scalar_lea.vmem [#allocation2], %s1061_s1  ;;  %s1249_s1 = scalar_lea.hbm %s1602_s13, 16 }
 0x3fb   : > { %v667_v41 = vpop.xlane.xlu1 %666 }
 0x403   : > { %v661_v39 = vpop.xlane.xlu1 %660 }
 0x404   : > { %1217 = vrcp.f32 %v661_v39 }
 0x405   : > { %1219 = vrcp.f32 %v667_v41 }
 0x40a   : > { %v1218_v42 = vpop.eup %1217 }
 0x40b   : > { %v673_v43 = vmul.f32 %v1218_v42, %v1212_v26  ;;  %v1220_v45 = vpop.eup %1219  ;;  %v1202_v42 = vld [vmem:[%s1597_s8] ss:$0 sm:$0xff] }
 0x40c   : > { %v675_v46 = vmul.f32 %v1220_v45, %v1210_v24 }
 0x40d   : > { %v677_v44 = vpack.c.bf16 %v673_v43, %v673_v43 }
 0x40e   : > { %v679_v51 = vpack.c.bf16 %v675_v46, %v675_v46  ;;  %v1145_v46 = vld [vmem:[%s1600_s11 + $0x28] sm:$0xff] }
 0x40f   : > { %1077 = vmatmul.msk.bf16.vlgmr.msrb.gmra.mxu2 %vm540_vm5, %v677_v44 }
 0x41b   : > { %v745_v47 = vpop.permute.xlu1 %744 }
 0x41c   : > { %v750_v48 = vsel %vm685_vm7, %v745_v47, 0  ;;  %v1144_v47 = vld [vmem:[%s1600_s11 + $0x20] sm:$0xff] }
 0x41d   : > { %759 = vmatpush.bf16.msra.mxu0 %v750_v48  ;;  %v1143_v48 = vld [vmem:[%s1600_s11 + $0x18] sm:$0xff] }
 0x420   : > { %1079 = vmatmul.msk.bf16.vlgmr.msra.gmra.mxu0 %vm540_vm5, %v679_v51  ;;  %v1142_v51 = vld [vmem:[%s1600_s11 + $0x10] sm:$0xff] }
 0x421   : > { %v664_v49 = vpop.xlane.xlu2 %663 }
 0x422   : > { %1221 = vrcp.f32 %v664_v49  ;;  %v1141_v49 = vld [vmem:[%s1600_s11 + $0x8] sm:$0xff] }
 0x428   : > { %v1222_v50 = vpop.eup %1221 }
 0x429   : > { %v674_v52 = vmul.f32 %v1222_v50, %v1214_v35  ;;  %v658_v53 = vpop.xlane.xlu0 %657  ;;  %v724_v54 = vpop.permute.xlu2 %723  ;;  %v1140_v50 = vld [vmem:[%s1600_s11] sm:$0xff] }
 0x42a   : > { %1223 = vrcp.f32 %v658_v53  ;;  %v729_v55 = vsel %vm685_vm7, %v724_v54, 0 }
 0x42b   : > { %738 = vmatpush.bf16.msrb.mxu3 %v729_v55  ;;  %v678_v56 = vpack.c.bf16 %v674_v52, %v674_v52  ;;  %v1203_v52 = vld [vmem:[%s1599_s10] ss:$0 sm:$0xff] }
 0x42e   : > { %1078 = vmatmul.msk.bf16.vlgmr.msrb.gmra.mxu3 %vm540_vm5, %v678_v56 }
 0x42f   : > { %967 = vmatpush.bf16.msra.mxu3 %v1147_v29 }
 0x430   : > { %v1224_v57 = vpop.eup %1223 }
 0x431   : > { %v672_v58 = vmul.f32 %v1224_v57, %v1216_v38  ;;  %v681_v59 = vpop.permute.xlu2 %680 }
 0x432   : > { %v687_v60 = vsel %vm685_vm7, %v681_v59, 0 }
 0x433   : > { %v676_v61 = vpack.c.bf16 %v672_v58, %v672_v58  ;;  %696 = vmatpush.bf16.msrb.mxu1 %v687_v60  ;;  %968 = vmatpush.bf16.msra.mxu3 %v1146_v32 }
 0x436   : > { %1076 = vmatmul.msk.bf16.vlgmr.msrb.gmra.mxu1 %vm540_vm5, %v676_v61 }
 0x437   : > { %812 = vmatpush.bf16.msra.mxu1 %v1137_v7  ;;  %969 = vmatpush.bf16.msra.mxu3 %v1145_v46 }
 0x43b   : > { %813 = vmatpush.bf16.msra.mxu1 %v1136_v9  ;;  %970 = vmatpush.bf16.msra.mxu3 %v1144_v47 }
 0x43f   : > { %971 = vmatpush.bf16.msra.mxu3 %v1143_v48 }
 0x443   : > { %972 = vmatpush.bf16.msra.mxu3 %v1142_v51 }
 0x447   : > { %973 = vmatpush.bf16.msra.mxu3 %v1141_v49 }
 0x44b   : > { %974 = vmatpush.bf16.msra.mxu3 %v1140_v50 }
 0x492   : > { %v719_v62 = vpop.f32.mrf.mxu2 }
 0x493   : > { %766 = vrot.lane.b32.xlu1 %v719_v62, %s1300_s24  ;;  %s995_s24 = sshll.u32 %s431_s23, 4  ;;  %s996_s24 = int_to_ptr.vmem [resolvable:$true] %s995_s24 }
 0x49a   : > { %v721_v63 = vpop.f32.mrf.mxu2 }
 0x49d   : > { %v761_v1 = vpop.f32.mrf.mxu0 }
 0x49e   : > { %774 = vrot.lane.b32.xlu1 %v761_v1, %s1301_s30  ;;  %s1131_s30 = sshll.u32 %s1394_s29, 3  ;;  %s983_s29 = scalar_lea.sflag [#allocation3], %s429_s0 }
 0x49f   : > { %s993_s22 = scalar_lea.hbm %s1602_s13, %s1131_s30 }
 0x4a0   : > { %s997_s2 = sshll.u32 %s993_s22, 4  ;;  %s998_s2 = int_to_ptr.hbm [resolvable:$true] %s997_s2 }
 0x4a1   : > { %s1243_s3 = sshra.s32 %s998_s2, 4  ;;  %s1244_s3 = int_to_ptr.hbm [resolvable:$true] %s1243_s3 }
 0x4a2   : > { %p1250_p0 = scmp.lt.s32.totalorder %s1244_s3, %s1602_s13 }
 0x4a5   : > { %v763_v2 = vpop.f32.mrf.mxu0 }
 0x4b1   : > { %v740_v3 = vpop.f32.mrf.mxu3 }
 0x4b2   : > { %770 = vrot.lane.b32.xlu2 %v740_v3, %s1302_s15  ;;  %v1204_v3 = vld [vmem:[%s1601_s12] ss:$0 sm:$0xff]  ;;  %s1245_s15 = scalar_lea.hbm %s1244_s3, 8 }
 0x4b3   : > { %v698_v4 = vpop.f32.mrf.mxu1  ;;  %p1246_p11 = scmp.ne.s32.totalorder %s1244_s3, %s1245_s15  ;;  %p1251_p1 = scmp.lt.s32.totalorder %s1249_s1, %s1245_s15 }
 0x4b5   : > { %p1247_p12 = pnand %p1246_p11, %p1411_p5  ;;  %p1252_p2 = por %p1251_p1, %p1250_p0 }
 0x4b7   : > { %p1248_p13 = pneg %p1247_p12 }
 0x4b9   : > { %v742_v5 = vpop.f32.mrf.mxu3  ;;  %p1253_p3 = pnand %p1252_p2, %p1248_p13 }
 0x4bb   : > { %v700_v6 = vpop.f32.mrf.mxu1 }
 0x505   : > { %v767_v10 = vpop.permute.xlu1 %766 }
 0x506   : > { %v777_v12 = vsel %vm540_vm5, %v698_v4, %v767_v10 }
 0x50c   : > { %v771_v11 = vpop.permute.xlu2 %770 }
 0x50d   : > { %v779_v13 = vsel %vm778_vm8, %v777_v12, %v771_v11 }
 0x510   : > { %v775_v14 = vpop.permute.xlu1 %774 }
 0x511   : > { %v781_v15 = vsel %vm780_vm9, %v779_v13, %v775_v14 }
 0x512   : > { %v782_v16 = vpack.c.bf16 %v781_v15, %v781_v15 }
 0x514   : > { %1088 = vmatmul.msk.bf16.vlgmr.msra.gmra.mxu1 %vm440_vm0, %v782_v16 }
 0x591   : > { %v815_v18 = vpop.f32.mrf.mxu1 }
 0x592   : > { %v816_v19 = vadd.f32 %v1200_v17, %v815_v18 }
 0x594   : > { %v1504_v20 = vadd.f32 %v816_v19, %v1426_v0  ;;  %v1138_v0 = vld [vmem:[%s1598_s9] sm:$0xff] }
 0x595   : > { %883 = vmatpush.bf16.msra.mxu2 %v1138_v0 }
 0x596   : > { %v822_v21 = vsel %vm440_vm0, %v1504_v20, 0.0 }
 0x597   : > { %823 = vadd.xlane.f32.xlu2 %v822_v21 }
 0x599   : > { %v817_v22 = vpop.f32.mrf.mxu1 }
 0x60a   : > { %v824_v23 = vpop.xlane.xlu2 %823 }
 0x60b   : > { %v825_v24 = vmul.f32 %v824_v23, %v1430_v8 }
 0x60d   : > { %v826_v25 = vsub.f32 %v1504_v20, %v825_v24 }
 0x60f   : > { %v827_v26 = vmul.f32 %v826_v25, %v826_v25 }
 0x611   : > { %v828_v27 = vsel %vm440_vm0, %v827_v26, 0.0 }
 0x612   : > { %829 = vadd.xlane.f32.xlu1 %v828_v27 }
 0x685   : > { %v830_v30 = vpop.xlane.xlu1 %829 }
 0x686   : > { %v831_v31 = vmul.f32 %v830_v30, %v1430_v8  ;;  %v1201_v8 = vld [vmem:[%s1596_s7] ss:$0 sm:$0xff] }
 0x688   : > { %v832_v33 = vadd.f32 1e-05, %v831_v31 }
 0x68a   : > { %1225 = vrsqrt.f32 %v832_v33  ;;  %vm839_vm11 = vweird.f32 %v832_v33 }
 0x690   : > { %v1226_v34 = vpop.eup %1225 }
 0x691   : > { %v834_v35 = vmul.f32 %v1226_v34, %v832_v33  ;;  %vm840_vm10 = vweird.f32 %v1226_v34 }
 0x692   : > { %vm841_vm12 = vmor %vm839_vm11, %vm840_vm10 }
 0x693   : > { %v835_v36 = vmul.f32 %v1226_v34, %v834_v35 }
 0x695   : > { %v836_v37 = vmul.f32 0.5, %v835_v36 }
 0x697   : > { %v837_v38 = vsub.f32 1.5, %v836_v37 }
 0x699   : > { %v838_v40 = vmul.f32 %v1226_v34, %v837_v38 }
 0x69b   : > { %v842_v41 = vsel %vm841_vm12, %v1226_v34, %v838_v40 }
 0x69c   : > { %v843_v39 = vmul.f32 %v842_v41, %v826_v25 }
 0x69e   : > { %v847_v43 = vmul.f32 %v1201_v8, %v843_v39 }
 0x6a0   : > { %v851_v44 = vadd.f32 %v1202_v42, %v847_v43 }
 0x6a2   : > { %v852_v45 = vpack.c.bf16 %v851_v44, %v851_v44 }
 0x6a4   : > { %1097 = vmatmul.msk.bf16.vlgmr.msra.gmra.mxu2 %vm440_vm0, %v852_v45 }
 0x727   : > { %v885_v53 = vpop.f32.mrf.mxu2 }
 0x728   : > { %v886_v54 = vadd.f32 %v1203_v52, %v885_v53 }
 0x72a   : > { %v889_v55 = vmul.f32 %v886_v54, %v886_v54  ;;  %v891_v62 = vmul.f32 0.5, %v886_v54 }
 0x72c   : > { %v890_v56 = vmul.f32 %v889_v55, %v886_v54 }
 0x72e   : > { %v892_v57 = vmul.f32 0.044715, %v890_v56 }
 0x72f   : > { %v887_v58 = vpop.f32.mrf.mxu2 }
 0x730   : > { %v893_v59 = vadd.f32 %v892_v57, %v886_v54 }
 0x732   : > { %v894_v60 = vmul.f32 0.7978846, %v893_v59 }
 0x734   : > { %1227 = vtanh.f32 %v894_v60 }
 0x73a   : > { %v1228_v61 = vpop.eup %1227 }
 0x73b   : > { %v896_v63 = vadd.f32 1.0, %v1228_v61 }
 0x73d   : > { %v897_v1 = vmul.f32 %v896_v63, %v891_v62 }
 0x73f   : > { %v898_v2 = vpack.c.bf16 %v897_v1, %v897_v1 }
 0x741   : > { %975 = vmatmul.bf16.vlgmr.msra.gmra.mxu3 %v898_v2 }
 0x7c4   : > { %v976_v4 = vpop.f32.mrf.mxu3 }
 0x7c5   : > { %v977_v5 = vadd.f32 %v1204_v3, %v976_v4 }
 0x7c7   : > { %v980_v6 = vadd.f32 %v977_v5, %v1504_v20 }
 0x7c9   : > { %981 = vst.msk [vmem:[%s431_s23] sm:$0xff] %vm440_vm0, %v980_v6 }
 0x7ca   : > { %1256 = shalt.err (!%p1253_p3)
}
 0x7cb   : > { %1148 = dma.vmem_to_hbm [thread:$0]  (%p1411_p5), %s996_s24, 128, %s998_s2, %s983_s29  }
 0x7cc   : > { %v978_v7 = vpop.f32.mrf.mxu3 }
 0x7cd PF: > { %p1154_p4 = scmp.ge.s32.totalorder %s1291_s28, 2  ;;  %s1009_s0 = sand.u32 1, %s1279_s25  }
 0x7ce   : > { %s1010_s22 = scalar_lea.sflag [#allocation3], %s1009_s0 }
 0x7cf   : > { %p1151_p7 = pnand %p1154_p4, %p1415_p6 }
 0x7d1   : > { %p1152_p8 = pneg %p1151_p7 }
 0x7d3   : > { %1274 = dma.done.wait (%p1152_p8), %s1010_s22, 128  }
 0x7d4   : > { %1276 = vsyncadd (%p1152_p8), %s1010_s22, 4294967168  ;;  %p23_p9 = scmp.ge.s32.totalorder %s1398_s14, 4   ;;  %s1613_s25 = smov %s1283_s26 }
 0x7d5   : > { %s1614_s26 = smov %s1287_s27  ;;  %s1615_s27 = smov %s1409_s17 }
 0x7d6   : > { %s1616_s28 = smov %s1398_s14  ;;  %25 = sbr.rel (!%p23_p9) target bundleno = 8 (0x8), region = 107 }
 0x7db   :  { %1016 = vsyncpa [#allocation3], 1 }
 0x7dc   :  { %1018 = vsyncpa [#allocation3 + $0x1], 1 }

</bundles_post_ra>
